<compile_context>
chip_gen: v7x
topology: tpu7x:2x2x1
jax: 0.10.0
libtpu: 0.0.40
codegen_flags: <defaults>
</compile_context>

<pallas_src>
import jax
import jax.numpy as jnp
import numpy as np
from jax.experimental import pallas as pl
from jax.experimental.pallas import tpu as pltpu


def _round_up(v, m):
    return ((v + m - 1) // m) * m


def _vmem_capacity_bytes():
    """Physical VMEM of the local TPU generation (conservative fallback)."""
    try:
        cap = int(pltpu.get_tpu_info().vmem_capacity_bytes)
        return max(cap, 64 * 1024 * 1024)
    except Exception:
        return 64 * 1024 * 1024          # v7x-safe fallback


def _vmem_need_bytes(tile_n, P, C, C1, C2, itemsize):
    """Estimated VMEM usage for one grid step with row tile `tile_n`."""
    x_bytes = tile_n * P * C * itemsize                    # one x input buffer
    out_bytes = tile_n * 4                                  # one output buffer
    param_bytes = 4 * (C * C1 + C1 + C1 * C2 + C2 + C2 + 1)
    chunk_rows = min(P, 8 if itemsize >= 4 else 16)
    temp_bytes = 3 * 4 * tile_n * chunk_rows * C            # f32 cast temps in the P-sum
    act_bytes = 4 * tile_n * (C + C1 + C2 + 1)              # feat / h1 / h2 / logits
    return 2 * x_bytes + 2 * out_bytes + 2 * param_bytes + temp_bytes + act_bytes


def _grasp_classifier_kernel(x_ref, w1_ref, b1_ref, w2_ref, b2_ref,
                             w3_ref, b3_ref, o_ref):
    # x_ref: (TN, P, C) tile of gathered features (f32 or opt-in bf16).
    tn, P, C = x_ref.shape
    itemsize = jnp.dtype(x_ref.dtype).itemsize
    # Rows per sublane-packed vreg for this dtype: 8 f32 / 16 bf16 / 32 int8.
    chunk = {4: 8, 2: 16, 1: 32}.get(itemsize, 8)

    feat = jnp.zeros((tn, C), jnp.float32)

    def add_rows(acc, p0, sz):
        return acc + jnp.sum(x_ref[:, p0:p0 + sz, :].astype(jnp.float32), axis=1)

    pos = 0

    # Sub-32-bit inputs: pre-add two packed chunks in the *native* dtype (one
    # packed VPU add covers 2 elements per 32-bit lane slot) before the f32
    # cast + accumulate -> roughly halves VALU work in the P-reduction, which
    # keeps the kernel on the HBM roofline on v7x.
    if itemsize < 4:
        n_pair = P // (2 * chunk)
        if n_pair > 8:
            def pair_body(i, acc):
                p0 = pl.multiple_of(i * 2 * chunk, chunk)
                a = x_ref[:, pl.ds(p0, chunk), :]
                b = x_ref[:, pl.ds(p0 + chunk, chunk), :]
                return acc + jnp.sum((a + b).astype(jnp.float32), axis=1)
            feat = jax.lax.fori_loop(0, n_pair, pair_body, feat, unroll=2)
        else:
            for i in range(n_pair):
                s0 = i * 2 * chunk
                a = x_ref[:, s0:s0 + chunk, :]
                b = x_ref[:, s0 + chunk:s0 + 2 * chunk, :]
                feat = feat + jnp.sum((a + b).astype(jnp.float32), axis=1)
        pos = n_pair * 2 * chunk

    # Remaining full chunks (all of P when the input is f32).
    n_full = (P - pos) // chunk
    if n_full > 8:
        base = pos
        def chunk_body(i, acc):
            p0 = pl.multiple_of(base + i * chunk, chunk)
            return acc + jnp.sum(x_ref[:, pl.ds(p0, chunk), :].astype(jnp.float32), axis=1)
        feat = jax.lax.fori_loop(0, n_full, chunk_body, feat, unroll=4)
    else:
        for i in range(n_full):
            feat = add_rows(feat, pos + i * chunk, chunk)
    pos += n_full * chunk

    # Ragged tail of the P axis.
    if pos < P:
        feat = add_rows(feat, pos, P - pos)

    # conv1: Conv1d(C -> C1, k=1) + ReLU   (MXU; 1/P of the AvgPool folded into W1)
    h1 = jnp.dot(feat, w1_ref[...], preferred_element_type=jnp.float32) + b1_ref[...]
    h1 = jnp.maximum(h1, 0.0)                                     # (TN, C1)

    # score[0]: Conv1d(C1 -> C2, k=1) + ReLU   (MXU)
    h2 = jnp.dot(h1, w2_ref[...], preferred_element_type=jnp.float32) + b2_ref[...]
    h2 = jnp.maximum(h2, 0.0)                                     # (TN, C2)

    # score[1]: Conv1d(C2 -> 1, k=1) as a VPU multiply + lane reduce
    # (a 1-column MXU matmul would waste almost all output lanes).
    logits = jnp.sum(h2 * w3_ref[...], axis=-1, keepdims=True) + b3_ref[...]  # (TN, 1)
    o_ref[...] = jax.nn.sigmoid(logits).astype(o_ref.dtype)


def grasp_classifier_forward(gather_feat, params, *, tile_n=None, in_dtype=None,
                             vmem_budget_bytes=None):
    """gather_feat: (B, M, P, C) -> scores (B, M, 1), float32.

    tile_n: rows per grid step (auto-chosen if None against a generation-aware
            VMEM budget).
    in_dtype: optional dtype to cast gather_feat to before the kernel.  Leave
              None (default) unless the producer already emits that dtype —
              a standalone cast adds a full extra HBM pass to an HBM-bound op.
              Compute/accumulation is always f32 inside the kernel.
    """
    B, M, P, C = gather_feat.shape
    N = B * M

    w1, b1, w2, b2, w3, b3 = params
    C1 = w1.shape[1]
    C2 = w2.shape[1]

    if in_dtype is not None and gather_feat.dtype != in_dtype:
        gather_feat = gather_feat.astype(in_dtype)          # explicit opt-in only
    itemsize = jnp.dtype(gather_feat.dtype).itemsize

    # Generation-aware VMEM budget: v5e/v6e have 128 MiB physical, v7x 64 MiB/TC.
    vmem_cap = _vmem_capacity_bytes()
    if vmem_budget_bytes is None:
        vmem_budget_bytes = (100 << 20) if vmem_cap >= (100 << 20) else (44 << 20)

    # Pick the largest power-of-two row tile whose full (double-buffered input +
    # params + cast temporaries + activations) estimate fits the budget.
    if tile_n is None:
        tile_n = 128
        while (tile_n < (1 << 15) and
               _vmem_need_bytes(2 * tile_n, P, C, C1, C2, itemsize) <= vmem_budget_bytes):
            tile_n *= 2
        if N >= 256:
            # Keep >= 2 grid steps so the "parallel" axis can span v7x's two TCs.
            tile_n = min(tile_n, _round_up(pl.cdiv(N, 2), 128))
    tile_n = _round_up(max(int(tile_n), 8), 8)
    # Keep every block's *start* in-bounds; only the last block's tail may be
    # ragged (masked stores / discarded OOB reads).  No padded copy of x.
    tile_n = min(tile_n, max(8, (N // 8) * 8) if N >= 8 else N)

    grid = pl.cdiv(N, tile_n)
    x = gather_feat.reshape(N, P, C)        # metadata-only (merges leading dims)

    # Fold the AvgPool's 1/P into W1; kernel then only sums over P.
    w1s = w1.astype(jnp.float32) * (1.0 / P)
    w2f = w2.astype(jnp.float32)
    w3_row = w3.astype(jnp.float32).reshape(1, C2)     # (C2, 1) -> (1, C2)
    b1f = b1.astype(jnp.float32)
    b2f = b2.astype(jnp.float32)
    b3f = b3.astype(jnp.float32)

    # VMEM limit tracks the actual estimated need (+slack), bounded by physical.
    vmem_need = _vmem_need_bytes(tile_n, P, C, C1, C2, itemsize)
    vmem_limit_bytes = int(min(max(vmem_need + (16 << 20), 32 << 20),
                               vmem_cap - (4 << 20)))

    param_bytes = 4 * (C * C1 + C1 + C1 * C2 + C2 + C2 + 1)
    cost = pl.CostEstimate(
        flops=2 * N * (C * C1 + C1 * C2 + C2) + N * P * C,
        transcendentals=N,
        bytes_accessed=N * P * C * itemsize + N * 4 + param_bytes,
    )

    out = pl.pallas_call(
        _grasp_classifier_kernel,
        out_shape=jax.ShapeDtypeStruct((N, 1), jnp.float32),
        grid_spec=pltpu.PrefetchScalarGridSpec(
            num_scalar_prefetch=0,
            grid=(grid,),
            in_specs=[
                pl.BlockSpec((tile_n, P, C), lambda i: (i, 0, 0)),  # x tile
                pl.BlockSpec((C, C1), lambda i: (0, 0)),            # W1 / P
                pl.BlockSpec((1, C1), lambda i: (0, 0)),            # b1
                pl.BlockSpec((C1, C2), lambda i: (0, 0)),           # W2
                pl.BlockSpec((1, C2), lambda i: (0, 0)),            # b2
                pl.BlockSpec((1, C2), lambda i: (0, 0)),            # W3 row
                pl.BlockSpec((1, 1), lambda i: (0, 0)),             # b3
            ],
            out_specs=pl.BlockSpec((tile_n, 1), lambda i: (i, 0)),
        ),
        compiler_params=pltpu.CompilerParams(
            dimension_semantics=("parallel",),
            vmem_limit_bytes=vmem_limit_bytes,
        ),
        cost_estimate=cost,
    )(x, w1s, b1f, w2f, b2f, w3_row, b3f)

    return out.reshape(B, M, 1)


def init_params(key, input_dim, c1, c2):
    """Deterministic synthetic weights for the three 1x1 convs (stored as (in, out))."""
    ks = jax.random.split(key, 6)
    scale = 0.1
    w1 = jax.random.normal(ks[0], (input_dim, c1), jnp.float32) * scale
    b1 = jax.random.normal(ks[1], (1, c1), jnp.float32) * scale
    w2 = jax.random.normal(ks[2], (c1, c2), jnp.float32) * scale
    b2 = jax.random.normal(ks[3], (1, c2), jnp.float32) * scale
    w3 = jax.random.normal(ks[4], (c2, 1), jnp.float32) * scale
    b3 = jax.random.normal(ks[5], (1, 1), jnp.float32) * scale
    return (w1, b1, w2, b2, w3, b3)


def reference_forward(gather_feat, params):
    """Pure-JAX reference matching the PyTorch forward (f32)."""
    w1, b1, w2, b2, w3, b3 = params
    feat = jnp.mean(gather_feat.astype(jnp.float32), axis=2)     # avg over point_num
    h1 = jnp.maximum(feat @ w1 + b1, 0.0)
    h2 = jnp.maximum(h1 @ w2 + b2, 0.0)
    return jax.nn.sigmoid(h2 @ w3 + b3)                          # (B, M, 1)


if __name__ == "__main__":
    # Small shapes consistent with the module (scaled down from 256/50/512/256):
    B, M = 2, 50            # batch, number of sampled grasp points (N=100, not tile-aligned)
    P = 8                   # point_num (neighborhood size)
    C = 32                  # input_dim
    C1, C2 = 64, 32         # hidden widths of conv1 / score[0]

    key = jax.random.PRNGKey(0)
    k_x, k_p = jax.random.split(key)
    gather_feat = jax.random.normal(k_x, (B, M, P, C), jnp.float32)
    params = init_params(k_p, C, C1, C2)

    ref = reference_forward(gather_feat, params)

    # 1) Default f32 path, auto tile (N=100 -> tile 96, 2 grid steps, ragged tail).
    out_f32 = grasp_classifier_forward(gather_feat, params)
    out_f32 = jax.block_until_ready(out_f32)
    np.testing.assert_allclose(np.asarray(out_f32), np.asarray(ref), rtol=1e-5, atol=1e-5)
    assert out_f32.shape == (B, M, 1)

    # 2) Opt-in bf16 input path, explicit tile_n=64 -> 2 grid steps, ragged tail.
    out_bf16 = grasp_classifier_forward(gather_feat, params, tile_n=64,
                                        in_dtype=jnp.bfloat16)
    out_bf16 = jax.block_until_ready(out_bf16)
    np.testing.assert_allclose(np.asarray(out_bf16), np.asarray(ref), rtol=5e-2, atol=5e-3)
    assert out_bf16.shape == (B, M, 1)

    print("KERNEL_OK")
</pallas_src>

<mosaic_0001>
module attributes {stable_mosaic.version = 11 : i64} {
  func.func @_grasp_classifier_kernel(%arg0: i32, %arg1: memref<96x8x32xf32, #tpu.memory_space<vmem>>, %arg2: memref<32x64xf32, #tpu.memory_space<vmem>>, %arg3: memref<1x64xf32, #tpu.memory_space<vmem>>, %arg4: memref<64x32xf32, #tpu.memory_space<vmem>>, %arg5: memref<1x32xf32, #tpu.memory_space<vmem>>, %arg6: memref<1x32xf32, #tpu.memory_space<vmem>>, %arg7: memref<1x1xf32, #tpu.memory_space<vmem>>, %arg8: memref<96x1xf32, #tpu.memory_space<vmem>>) attributes {dimension_semantics = [#tpu.dimension_semantics<parallel>], iteration_bounds = array<i64: 2>, scalar_prefetch = 0 : i64, scratch_operands = 0 : i64, tpu.core_type = #tpu.core_type<tc>, window_params = [{transform_indices = @transform_0, window_bounds = array<i64: 96, 8, 32>}, {pipeline_mode = #tpu.pipeline_mode<synchronous>, transform_indices = @transform_1, window_bounds = array<i64: 32, 64>}, {pipeline_mode = #tpu.pipeline_mode<synchronous>, transform_indices = @transform_2, window_bounds = array<i64: 1, 64>}, {pipeline_mode = #tpu.pipeline_mode<synchronous>, transform_indices = @transform_3, window_bounds = array<i64: 64, 32>}, {pipeline_mode = #tpu.pipeline_mode<synchronous>, transform_indices = @transform_4, window_bounds = array<i64: 1, 32>}, {pipeline_mode = #tpu.pipeline_mode<synchronous>, transform_indices = @transform_5, window_bounds = array<i64: 1, 32>}, {pipeline_mode = #tpu.pipeline_mode<synchronous>, transform_indices = @transform_6, window_bounds = array<i64: 1, 1>}, {transform_indices = @transform_7, window_bounds = array<i64: 96, 1>}]} {
    %cst = arith.constant 0.000000e+00 : f32
    %0 = vector.broadcast %cst : f32 to vector<96x32xf32>
    %c0 = arith.constant 0 : index
    %c0_0 = arith.constant 0 : index
    %c0_1 = arith.constant 0 : index
    %1 = vector.load %arg1[%c0, %c0_0, %c0_1] : memref<96x8x32xf32, #tpu.memory_space<vmem>>, vector<96x8x32xf32>
    %cst_2 = arith.constant dense<0.000000e+00> : vector<96x32xf32>
    %2 = vector.multi_reduction <add>, %1, %cst_2 [1] : vector<96x8x32xf32> to vector<96x32xf32>
    %3 = arith.addf %0, %2 : vector<96x32xf32>
    %c0_3 = arith.constant 0 : index
    %c0_4 = arith.constant 0 : index
    %4 = vector.load %arg2[%c0_3, %c0_4] : memref<32x64xf32, #tpu.memory_space<vmem>>, vector<32x64xf32>
    %cst_5 = arith.constant dense<0.000000e+00> : vector<96x64xf32>
    %5 = tpu.matmul %3, %4, %cst_5 {dimension_numbers = #tpu.dot_dimension_numbers<[1], [0], [0], [1], [0, 0, 1, 1], [], []>} : vector<96x32xf32>, vector<32x64xf32>, vector<96x64xf32> -> vector<96x64xf32>
    %c0_6 = arith.constant 0 : index
    %c0_7 = arith.constant 0 : index
    %6 = vector.load %arg3[%c0_6, %c0_7] : memref<1x64xf32, #tpu.memory_space<vmem>>, vector<1x64xf32>
    %7 = vector.broadcast %6 : vector<1x64xf32> to vector<96x64xf32>
    %8 = arith.addf %5, %7 : vector<96x64xf32>
    %cst_8 = arith.constant 0.000000e+00 : f32
    %9 = vector.broadcast %cst_8 : f32 to vector<96x64xf32>
    %10 = arith.maximumf %8, %9 : vector<96x64xf32>
    %c0_9 = arith.constant 0 : index
    %c0_10 = arith.constant 0 : index
    %11 = vector.load %arg4[%c0_9, %c0_10] : memref<64x32xf32, #tpu.memory_space<vmem>>, vector<64x32xf32>
    %cst_11 = arith.constant dense<0.000000e+00> : vector<96x32xf32>
    %12 = tpu.matmul %10, %11, %cst_11 {dimension_numbers = #tpu.dot_dimension_numbers<[1], [0], [0], [1], [0, 0, 1, 1], [], []>} : vector<96x64xf32>, vector<64x32xf32>, vector<96x32xf32> -> vector<96x32xf32>
    %c0_12 = arith.constant 0 : index
    %c0_13 = arith.constant 0 : index
    %13 = vector.load %arg5[%c0_12, %c0_13] : memref<1x32xf32, #tpu.memory_space<vmem>>, vector<1x32xf32>
    %14 = vector.broadcast %13 : vector<1x32xf32> to vector<96x32xf32>
    %15 = arith.addf %12, %14 : vector<96x32xf32>
    %cst_14 = arith.constant 0.000000e+00 : f32
    %16 = vector.broadcast %cst_14 : f32 to vector<96x32xf32>
    %17 = arith.maximumf %15, %16 : vector<96x32xf32>
    %c0_15 = arith.constant 0 : index
    %c0_16 = arith.constant 0 : index
    %18 = vector.load %arg6[%c0_15, %c0_16] : memref<1x32xf32, #tpu.memory_space<vmem>>, vector<1x32xf32>
    %19 = vector.broadcast %18 : vector<1x32xf32> to vector<96x32xf32>
    %20 = arith.mulf %17, %19 : vector<96x32xf32>
    %cst_17 = arith.constant dense<0.000000e+00> : vector<96xf32>
    %21 = vector.multi_reduction <add>, %20, %cst_17 [1] : vector<96x32xf32> to vector<96xf32>
    %22 = vector.shape_cast %21 : vector<96xf32> to vector<96x1xf32>
    %c0_18 = arith.constant 0 : index
    %c0_19 = arith.constant 0 : index
    %23 = vector.load %arg7[%c0_18, %c0_19] : memref<1x1xf32, #tpu.memory_space<vmem>>, vector<1x1xf32>
    %24 = vector.broadcast %23 : vector<1x1xf32> to vector<96x1xf32>
    %25 = arith.addf %22, %24 : vector<96x1xf32>
    %26 = arith.negf %25 : vector<96x1xf32>
    %27 = math.exp %26 : vector<96x1xf32>
    %cst_20 = arith.constant 1.000000e+00 : f32
    %28 = vector.broadcast %cst_20 : f32 to vector<96x1xf32>
    %29 = arith.addf %28, %27 : vector<96x1xf32>
    %30 = arith.divf %28, %29 : vector<96x1xf32>
    %c0_21 = arith.constant 0 : index
    %c0_22 = arith.constant 0 : index
    %31 = vector.load %arg8[%c0_21, %c0_22] : memref<96x1xf32, #tpu.memory_space<vmem>>, vector<96x1xf32>
    tpu.vector_store %arg8[%c0_21, %c0_22], %30 {strides = array<i32>} : memref<96x1xf32, #tpu.memory_space<vmem>>, vector<96x1xf32>,
    return
  }
  func.func @transform_0(%arg0: i32) -> (i32, i32, i32) {
    %c0_i32 = arith.constant 0 : i32
    %c0_i32_0 = arith.constant 0 : i32
    %c0_i32_1 = arith.constant 0 : i32
    return %arg0, %c0_i32, %c0_i32_0 : i32, i32, i32
  }
  func.func @transform_1(%arg0: i32) -> (i32, i32) {
    %c0_i32 = arith.constant 0 : i32
    %c0_i32_0 = arith.constant 0 : i32
    %c0_i32_1 = arith.constant 0 : i32
    return %c0_i32, %c0_i32_0 : i32, i32
  }
  func.func @transform_2(%arg0: i32) -> (i32, i32) {
    %c0_i32 = arith.constant 0 : i32
    %c0_i32_0 = arith.constant 0 : i32
    %c0_i32_1 = arith.constant 0 : i32
    return %c0_i32, %c0_i32_0 : i32, i32
  }
  func.func @transform_3(%arg0: i32) -> (i32, i32) {
    %c0_i32 = arith.constant 0 : i32
    %c0_i32_0 = arith.constant 0 : i32
    %c0_i32_1 = arith.constant 0 : i32
    return %c0_i32, %c0_i32_0 : i32, i32
  }
  func.func @transform_4(%arg0: i32) -> (i32, i32) {
    %c0_i32 = arith.constant 0 : i32
    %c0_i32_0 = arith.constant 0 : i32
    %c0_i32_1 = arith.constant 0 : i32
    return %c0_i32, %c0_i32_0 : i32, i32
  }
  func.func @transform_5(%arg0: i32) -> (i32, i32) {
    %c0_i32 = arith.constant 0 : i32
    %c0_i32_0 = arith.constant 0 : i32
    %c0_i32_1 = arith.constant 0 : i32
    return %c0_i32, %c0_i32_0 : i32, i32
  }
  func.func @transform_6(%arg0: i32) -> (i32, i32) {
    %c0_i32 = arith.constant 0 : i32
    %c0_i32_0 = arith.constant 0 : i32
    %c0_i32_1 = arith.constant 0 : i32
    return %c0_i32, %c0_i32_0 : i32, i32
  }
  func.func @transform_7(%arg0: i32) -> (i32, i32) {
    %c0_i32 = arith.constant 0 : i32
    %c0_i32_0 = arith.constant 0 : i32
    return %arg0, %c0_i32 : i32, i32
  }
}

</mosaic_0001>

<bundles_post_ra>
// kernel: tpu_custom_call.1
= control target key start
LH: loop header
LB: loop body
LE: loop exit
PB: predicated region body
PF: predicated region fallthrough
CT: control target
= control target key end

     0   :  { %s3118_s0 = inlined_call_operand.vmem [shape: f32[100,8,32], index: 0, kind: input, shape index: {}]   ;;  %s3119_s1 = inlined_call_operand.vmem [shape: f32[32,64], index: 1, kind: input, shape index: {}]   ;;  %s3120_s2 = inlined_call_operand.vmem [shape: f32[1,64], index: 2, kind: input, shape index: {}]   ;;  %s3121_s3 = inlined_call_operand.vmem [shape: f32[64,32], index: 3, kind: input, shape index: {}]   ;;  %s3122_s4 = inlined_call_operand.vmem [shape: f32[1,32], index: 4, kind: input, shape index: {}]   ;;  %s3123_s5 = inlined_call_operand.vmem [shape: f32[1,32], index: 5, kind: input, shape index: {}]   ;;  %s3124_s6 = inlined_call_operand.<no memory space> [shape: f32[1,1], index: 6, kind: input, shape index: {}]   ;;  %s3125_s7 = inlined_call_operand.vmem [shape: f32[100,1], index: 7, kind: output, shape index: {}]  }
   0x1   :  { %v12_v0 = vstv %s3124_s6 }
   0x2   :  { %13 = vst [vmem:[#allocation2] sm:$0x1] %v12_v0 }
   0x3   :  { %s2594_s26 = smov 0   ;;  %s2596_s27 = smov 0  }
   0x4   :  { %s2598_s28 = smov 0  }
   0x5 LB: > { %s2607_s6 = sadd.s32 4294967295, %s2517_s28   ;;  %s2609_s29 = sadd.s32 1, %s2517_s28   ;;  %s2517_s28 = sphi %s2598_s28, %s3132_s28   ;;  %s2513_s27 = sphi %s2596_s27, %s3131_s27   ;;  %s2509_s26 = sphi %s2594_s26, %s3130_s26  }
   0x6   : > { %s175_s30 = ssub.s32 %s2517_s28, %s2609_s29  ;;  %s178_s8 = sadd.s32 1, %s2513_s27 }
   0x7   : > { %p176_p0 = scmp.eq.s32.totalorder %s175_s30, 0  ;;  %p188_p1 = scmp.ne.s32.totalorder %s2513_s27, %s2509_s26 }
   0x8   : > { %p189_p2 = scmp.eq.s32.totalorder %s2607_s6, 1  ;;  %p2138_p3 = scmp.ge.s32.totalorder %s2517_s28, 1 }
   0x9   : > { %s2617_s9 = scalar_select %p176_p0, %s2513_s27, %s178_s8  }
   0xa   : > { %p2619_p4 = por %p189_p2, %p188_p1  ;;  %p248_p5 = scmp.lt.s32.totalorder %s2517_s28, 3 }
   0xc   : > { %p249_p6 = pnand %p2138_p3, %p248_p5 }
   0xd   : > { %v1167_v1 = vld [vmem:[%s3119_s1] sm:$0xff] (!%p249_p6)  ;;  %v1168_v2 = vld [vmem:[%s3119_s1 + $0x8] sm:$0xff] (!%p249_p6)  ;;  %v1169_v3 = vld [vmem:[%s3119_s1 + $0x10] sm:$0xff] (!%p249_p6)  ;;  %s2633_s17 = smul.u32 (!%p249_p6), 96, %s2607_s6  ;;  %vm398_vm0 = vcmask (!%p249_p6), 261120   ;;  %vm1274_vm1 = vcmask (!%p249_p6), 1041409  }
   0xe   : > { %252 = sbr.rel (%p249_p6) target bundleno = 890 (0x37a), region = 48  ;;  %v2289_v4 = vpack.c.bf16 (!%p249_p6), %v1168_v2, %v1167_v1  ;;  %v1170_v5 = vld [vmem:[%s3119_s1 + $0x18] sm:$0xff] (!%p249_p6)  ;;  %vm1276_vm2 = vcmask (!%p249_p6), 1042434   ;;  %vm1278_vm3 = vcmask (!%p249_p6), 1043459   ;;  %vm1280_vm4 = vcmask (!%p249_p6), 1044484   ;;  %s280_s12 = sand.u32 (!%p249_p6), 1, %s2509_s26  }
   0xf   : > { %v2293_v6 = vpack.c.bf16 (!%p249_p6), %v1170_v5, %v1169_v3  ;;  %p288_p7 = scmp.lt.s32.totalorder (!%p249_p6), %s2633_s17, 99  ;;  %vm1282_vm5 = vcmask (!%p249_p6), 1045509   ;;  %vm1284_vm6 = vcmask (!%p249_p6), 1046534   ;;  %vm1286_vm7 = vcmask (!%p249_p6), 1047559   ;;  %s2321_s13 = smul.u32 (!%p249_p6), 96, %s280_s12 }
  0x10   : > { %2290 = vmatprep.subr.bf16.mxu0 (!%p249_p6), %v2289_v4  ;;  %vm1541_vm8 = vcmask (!%p249_p6), 523264   ;;  %vm1861_vm9 = vcmask (!%p249_p6), 7168  }
  0x11   : > { %2292 = vmatpush3.bf16.msra.mxu0 (!%p249_p6), %v2289_v4  ;;  %s3023_s14 = scalar_lea.vmem (!%p249_p6), [#allocation3], %s2321_s13  }
  0x12   : > { %2294 = vmatprep.subr.bf16.mxu0 (!%p249_p6), %v2293_v6 }
  0x15   : > { %s289_s20 = scalar_select %p288_p7, %s2633_s17, 99  ;;  %2296 = vmatpush3.bf16.msra.mxu0 %v2293_v6 }
  0x16   : > { %s1881_s26 = smul.u32 (%p2619_p4), 12, %s2607_s6  ;;  %s3066_s18 = scalar_lea.vmem (%p2619_p4), %s3125_s7, %s2633_s17  }
  0x17   : > { %s2139_s21 = sshll.u32 %s289_s20, 3 }
  0x18   : > { %s2643_s24 = scalar_lea.vmem %s3118_s0, %s2139_s21  ;;  %s1882_s19 = ssub.s32 (%p2619_p4), 13, %s1881_s26 }
  0x19   : > { %v302_v7 = vld [vmem:[%s2643_s24] sm:$0xff]  ;;  %v303_v8 = vld [vmem:[%s2643_s24 + $0x8] sm:$0xff]  ;;  %v304_v9 = vld [vmem:[%s2643_s24 + $0x10] sm:$0xff]  ;;  %p1883_p8 = scmp.lt.s32.totalorder (%p2619_p4), %s1882_s19, 12 }
  0x1a   : > { %v305_v10 = vld [vmem:[%s2643_s24 + $0x18] sm:$0xff]  ;;  %v306_v11 = vld [vmem:[%s2643_s24 + $0x20] sm:$0xff]  ;;  %v307_v12 = vld [vmem:[%s2643_s24 + $0x28] sm:$0xff]  ;;  %v399_v13 = vsel %vm398_vm0, %v302_v7, 0.0  ;;  %v406_v14 = vsel %vm398_vm0, %v303_v8, 0.0  ;;  %v413_v15 = vsel %vm398_vm0, %v304_v9, 0.0 }
  0x1b   : > { %v308_v16 = vld [vmem:[%s2643_s24 + $0x30] sm:$0xff]  ;;  %v309_v17 = vld [vmem:[%s2643_s24 + $0x38] sm:$0xff]  ;;  %v400_v18 = vrot.slane %v399_v13, 4  ;;  %v407_v19 = vrot.slane %v406_v14, 4  ;;  %v414_v20 = vrot.slane %v413_v15, 4  ;;  %v420_v21 = vsel %vm398_vm0, %v305_v10, 0.0 }
  0x1c   : > { %v421_v22 = vrot.slane %v420_v21, 4  ;;  %v427_v23 = vsel %vm398_vm0, %v306_v11, 0.0  ;;  %v434_v24 = vsel %vm398_vm0, %v307_v12, 0.0  ;;  %v441_v25 = vsel %vm398_vm0, %v308_v16, 0.0  ;;  %v310_v58 = vld [vmem:[%s2643_s24 + $0x40] sm:$0xff]  ;;  %v311_v59 = vld [vmem:[%s2643_s24 + $0x48] sm:$0xff] }
  0x1d   : > { %v401_v26 = vadd.f32 %v400_v18, %v399_v13  ;;  %v408_v27 = vadd.f32 %v407_v19, %v406_v14  ;;  %v415_v28 = vadd.f32 %v414_v20, %v413_v15  ;;  %v428_v29 = vrot.slane %v427_v23, 4  ;;  %v312_v4 = vld [vmem:[%s2643_s24 + $0x50] sm:$0xff]  ;;  %v313_v7 = vld [vmem:[%s2643_s24 + $0x58] sm:$0xff]  ;;  %v314_v15 = vld [vmem:[%s2643_s24 + $0x60] sm:$0xff] }
  0x1e   : > { %v422_v30 = vadd.f32 %v421_v22, %v420_v21  ;;  %v435_v31 = vrot.slane %v434_v24, 4  ;;  %v442_v32 = vrot.slane %v441_v25, 4  ;;  %v448_v33 = vsel %vm398_vm0, %v309_v17, 0.0  ;;  %v315_v16 = vld [vmem:[%s2643_s24 + $0x68] sm:$0xff] }
  0x1f   : > { %v402_v34 = vrot.slane %v401_v26, 2  ;;  %v409_v35 = vrot.slane %v408_v27, 2  ;;  %v416_v36 = vrot.slane %v415_v28, 2  ;;  %v429_v37 = vadd.f32 %v428_v29, %v427_v23 }
  0x20   : > { %v423_v38 = vrot.slane %v422_v30, 2  ;;  %v436_v39 = vadd.f32 %v435_v31, %v434_v24  ;;  %v443_v40 = vadd.f32 %v442_v32, %v441_v25  ;;  %v449_v41 = vrot.slane %v448_v33, 4  ;;  %v316_v25 = vld [vmem:[%s2643_s24 + $0x70] sm:$0xff] }
  0x21   : > { %v403_v42 = vadd.f32 %v402_v34, %v401_v26  ;;  %v410_v43 = vadd.f32 %v409_v35, %v408_v27  ;;  %v417_v44 = vadd.f32 %v416_v36, %v415_v28  ;;  %v430_v45 = vrot.slane %v429_v37, 2  ;;  %v317_v34 = vld [vmem:[%s2643_s24 + $0x78] sm:$0xff] }
  0x22   : > { %v424_v46 = vadd.f32 %v423_v38, %v422_v30  ;;  %v437_v47 = vrot.slane %v436_v39, 2  ;;  %v444_v48 = vrot.slane %v443_v40, 2  ;;  %v450_v49 = vadd.f32 %v449_v41, %v448_v33 }
  0x23   : > { %v404_v50 = vrot.slane %v403_v42, 1  ;;  %v411_v51 = vrot.slane %v410_v43, 1  ;;  %v418_v52 = vrot.slane %v417_v44, 1  ;;  %v431_v53 = vadd.f32 %v430_v45, %v429_v37 }
  0x24   : > { %v425_v54 = vrot.slane %v424_v46, 1  ;;  %v438_v55 = vadd.f32 %v437_v47, %v436_v39  ;;  %v445_v56 = vadd.f32 %v444_v48, %v443_v40  ;;  %v451_v57 = vrot.slane %v450_v49, 2 }
  0x25   : > { %v405_v60 = vadd.f32 %v404_v50, %v403_v42  ;;  %v412_v61 = vadd.f32 %v411_v51, %v410_v43  ;;  %v419_v62 = vadd.f32 %v418_v52, %v417_v44  ;;  %v432_v63 = vrot.slane %v431_v53, 1 }
  0x26   : > { %v426_v0 = vadd.f32 %v425_v54, %v424_v46  ;;  %v439_v1 = vrot.slane %v438_v55, 1  ;;  %v446_v2 = vrot.slane %v445_v56, 1  ;;  %v452_v3 = vadd.f32 %v451_v57, %v450_v49 }
  0x27   : > { %v433_v5 = vadd.f32 %v432_v63, %v431_v53  ;;  %v1275_v6 = vsel %vm1274_vm1, %v412_v61, %v405_v60  ;;  %v455_v8 = vsel %vm398_vm0, %v310_v58, 0.0  ;;  %v462_v9 = vsel %vm398_vm0, %v311_v59, 0.0  ;;  %v318_v58 = vld [vmem:[%s2643_s24 + $0x80] sm:$0xff] }
  0x28   : > { %v440_v10 = vadd.f32 %v439_v1, %v438_v55  ;;  %v447_v11 = vadd.f32 %v446_v2, %v445_v56  ;;  %v453_v12 = vrot.slane %v452_v3, 1  ;;  %v1277_v13 = vsel %vm1276_vm2, %v419_v62, %v1275_v6 }
  0x29   : > { %v1279_v14 = vsel %vm1278_vm3, %v426_v0, %v1277_v13  ;;  %v456_v17 = vrot.slane %v455_v8, 4  ;;  %v463_v18 = vrot.slane %v462_v9, 4  ;;  %v469_v19 = vsel %vm398_vm0, %v312_v4, 0.0  ;;  %v321_v13 = vld [vmem:[%s2643_s24 + $0x98] sm:$0xff] }
  0x2a   : > { %v454_v20 = vadd.f32 %v453_v12, %v452_v3  ;;  %v1281_v21 = vsel %vm1280_vm4, %v433_v5, %v1279_v14  ;;  %v470_v22 = vrot.slane %v469_v19, 4  ;;  %v476_v23 = vsel %vm398_vm0, %v313_v7, 0.0  ;;  %v319_v3 = vld [vmem:[%s2643_s24 + $0x88] sm:$0xff]  ;;  %v320_v12 = vld [vmem:[%s2643_s24 + $0x90] sm:$0xff] }
  0x2b   : > { %v1283_v24 = vsel %vm1282_vm5, %v440_v10, %v1281_v21  ;;  %v457_v26 = vadd.f32 %v456_v17, %v455_v8  ;;  %v464_v27 = vadd.f32 %v463_v18, %v462_v9  ;;  %v477_v28 = vrot.slane %v476_v23, 4  ;;  %v322_v21 = vld [vmem:[%s2643_s24 + $0xa0] sm:$0xff] }
  0x2c   : > { %v1285_v29 = vsel %vm1284_vm6, %v447_v11, %v1283_v24  ;;  %v471_v30 = vadd.f32 %v470_v22, %v469_v19  ;;  %v483_v31 = vsel %vm398_vm0, %v314_v15, 0.0  ;;  %v490_v32 = vsel %vm398_vm0, %v315_v16, 0.0 }
  0x2d   : > { %v1287_v33 = vsel %vm1286_vm7, %v454_v20, %v1285_v29  ;;  %v458_v35 = vrot.slane %v457_v26, 2  ;;  %v465_v36 = vrot.slane %v464_v27, 2  ;;  %v478_v37 = vadd.f32 %v477_v28, %v476_v23  ;;  %v323_v29 = vld [vmem:[%s2643_s24 + $0xa8] sm:$0xff] }
  0x2e   : > { %2237 = vmatprep.mubr.msk.f32.mxu0 %vm398_vm0, %v1287_v33  ;;  %v472_v38 = vrot.slane %v471_v30, 2  ;;  %v484_v39 = vrot.slane %v483_v31, 4  ;;  %v491_v40 = vrot.slane %v490_v32, 4  ;;  %v497_v41 = vsel %vm398_vm0, %v316_v25, 0.0 }
  0x2f   : > { %v459_v42 = vadd.f32 %v458_v35, %v457_v26  ;;  %v466_v43 = vadd.f32 %v465_v36, %v464_v27  ;;  %v479_v44 = vrot.slane %v478_v37, 2  ;;  %v498_v45 = vrot.slane %v497_v41, 4 }
  0x30   : > { %v473_v46 = vadd.f32 %v472_v38, %v471_v30  ;;  %v485_v47 = vadd.f32 %v484_v39, %v483_v31  ;;  %v492_v48 = vadd.f32 %v491_v40, %v490_v32  ;;  %v504_v49 = vsel %vm398_vm0, %v317_v34, 0.0  ;;  %v324_v38 = vld [vmem:[%s2643_s24 + $0xb0] sm:$0xff] }
  0x31   : > { %v460_v50 = vrot.slane %v459_v42, 1  ;;  %v467_v51 = vrot.slane %v466_v43, 1  ;;  %v480_v52 = vadd.f32 %v479_v44, %v478_v37  ;;  %v499_v53 = vadd.f32 %v498_v45, %v497_v41 }
  0x32   : > { %v474_v54 = vrot.slane %v473_v46, 1  ;;  %v486_v55 = vrot.slane %v485_v47, 2  ;;  %v493_v56 = vrot.slane %v492_v48, 2  ;;  %v505_v57 = vrot.slane %v504_v49, 4 }
  0x33   : > { %v461_v59 = vadd.f32 %v460_v50, %v459_v42  ;;  %v468_v60 = vadd.f32 %v467_v51, %v466_v43  ;;  %v481_v61 = vrot.slane %v480_v52, 1  ;;  %v500_v62 = vrot.slane %v499_v53, 2 }
  0x34   : > { %v475_v63 = vadd.f32 %v474_v54, %v473_v46  ;;  %v487_v0 = vadd.f32 %v486_v55, %v485_v47  ;;  %v494_v1 = vadd.f32 %v493_v56, %v492_v48  ;;  %v506_v2 = vadd.f32 %v505_v57, %v504_v49  ;;  %v325_v46 = vld [vmem:[%s2643_s24 + $0xb8] sm:$0xff] }
  0x35   : > { %v482_v4 = vadd.f32 %v481_v61, %v480_v52  ;;  %v501_v5 = vadd.f32 %v500_v62, %v499_v53  ;;  %v1288_v6 = vsel %vm1274_vm1, %v468_v60, %v461_v59  ;;  %v511_v7 = vsel %vm398_vm0, %v318_v58, 0.0  ;;  %v326_v58 = vld [vmem:[%s2643_s24 + $0xc0] sm:$0xff] }
  0x36   : > { %v488_v8 = vrot.slane %v487_v0, 1  ;;  %v495_v9 = vrot.slane %v494_v1, 1  ;;  %v507_v10 = vrot.slane %v506_v2, 2  ;;  %v1289_v11 = vsel %vm1276_vm2, %v475_v63, %v1288_v6  ;;  %v327_v6 = vld [vmem:[%s2643_s24 + $0xc8] sm:$0xff] }
  0x37   : > { %v502_v14 = vrot.slane %v501_v5, 1  ;;  %v1290_v15 = vsel %vm1278_vm3, %v482_v4, %v1289_v11  ;;  %v512_v16 = vrot.slane %v511_v7, 4  ;;  %v518_v17 = vsel %vm398_vm0, %v319_v3, 0.0 }
  0x38   : > { %v489_v18 = vadd.f32 %v488_v8, %v487_v0  ;;  %v496_v19 = vadd.f32 %v495_v9, %v494_v1  ;;  %v508_v20 = vadd.f32 %v507_v10, %v506_v2  ;;  %v519_v22 = vrot.slane %v518_v17, 4 }
  0x39   : > { %v503_v23 = vadd.f32 %v502_v14, %v501_v5  ;;  %v513_v24 = vadd.f32 %v512_v16, %v511_v7  ;;  %v525_v25 = vsel %vm398_vm0, %v320_v12, 0.0  ;;  %v532_v26 = vsel %vm398_vm0, %v321_v13, 0.0 }
  0x3a   : > { %v509_v27 = vrot.slane %v508_v20, 1  ;;  %v1291_v28 = vsel %vm1280_vm4, %v489_v18, %v1290_v15  ;;  %v520_v30 = vadd.f32 %v519_v22, %v518_v17  ;;  %v526_v31 = vrot.slane %v525_v25, 4  ;;  %v328_v15 = vld [vmem:[%s2643_s24 + $0xd0] sm:$0xff] }
  0x3b   : > { %v1292_v32 = vsel %vm1282_vm5, %v496_v19, %v1291_v28  ;;  %v514_v33 = vrot.slane %v513_v24, 2  ;;  %v533_v34 = vrot.slane %v532_v26, 4  ;;  %v539_v35 = vsel %vm398_vm0, %v322_v21, 0.0 }
  0x3c   : > { %v510_v36 = vadd.f32 %v509_v27, %v508_v20  ;;  %v1293_v37 = vsel %vm1284_vm6, %v503_v23, %v1292_v32  ;;  %v521_v39 = vrot.slane %v520_v30, 2  ;;  %v527_v40 = vadd.f32 %v526_v31, %v525_v25  ;;  %v330_v32 = vld [vmem:[%s2643_s24 + $0xe0] sm:$0xff] }
  0x3d   : > { %v515_v41 = vadd.f32 %v514_v33, %v513_v24  ;;  %v534_v42 = vadd.f32 %v533_v34, %v532_v26  ;;  %v540_v43 = vrot.slane %v539_v35, 4  ;;  %v546_v44 = vsel %vm398_vm0, %v323_v29, 0.0  ;;  %v329_v24 = vld [vmem:[%s2643_s24 + $0xd8] sm:$0xff]  ;;  %v331_v33 = vld [vmem:[%s2643_s24 + $0xe8] sm:$0xff] }
  0x3e   : > { %v1294_v45 = vsel %vm1286_vm7, %v510_v36, %v1293_v37  ;;  %v522_v47 = vadd.f32 %v521_v39, %v520_v30  ;;  %v528_v48 = vrot.slane %v527_v40, 2  ;;  %v547_v49 = vrot.slane %v546_v44, 4 }
  0x3f   : > { %2238 = vmatmul.mubr.msk.f32.vlgmr.msra.gmra.mrb[0].mxu0 %vm398_vm0, %v1294_v45  ;;  %v516_v50 = vrot.slane %v515_v41, 1  ;;  %v535_v51 = vrot.slane %v534_v42, 2  ;;  %v541_v52 = vadd.f32 %v540_v43, %v539_v35  ;;  %v553_v53 = vsel %vm398_vm0, %v324_v38, 0.0 }
  0x40   : > { %v523_v54 = vrot.slane %v522_v47, 1  ;;  %v529_v55 = vadd.f32 %v528_v48, %v527_v40  ;;  %v548_v56 = vadd.f32 %v547_v49, %v546_v44  ;;  %v554_v57 = vrot.slane %v553_v53, 4 }
  0x41   : > { %v517_v59 = vadd.f32 %v516_v50, %v515_v41  ;;  %v536_v60 = vadd.f32 %v535_v51, %v534_v42  ;;  %v542_v61 = vrot.slane %v541_v52, 2  ;;  %v560_v62 = vsel %vm398_vm0, %v325_v46, 0.0  ;;  %v332_v41 = vld [vmem:[%s2643_s24 + $0xf0] sm:$0xff] }
  0x42   : > { %v524_v63 = vadd.f32 %v523_v54, %v522_v47  ;;  %v530_v0 = vrot.slane %v529_v55, 1  ;;  %v549_v1 = vrot.slane %v548_v56, 2  ;;  %v555_v2 = vadd.f32 %v554_v57, %v553_v53  ;;  %v333_v53 = vld [vmem:[%s2643_s24 + $0xf8] sm:$0xff] }
  0x43   : > { %v537_v3 = vrot.slane %v536_v60, 1  ;;  %v543_v4 = vadd.f32 %v542_v61, %v541_v52  ;;  %v561_v5 = vrot.slane %v560_v62, 4  ;;  %v567_v7 = vsel %vm398_vm0, %v326_v58, 0.0  ;;  %v334_v58 = vld [vmem:[%s2643_s24 + $0x100] sm:$0xff] }
  0x44   : > { %v531_v8 = vadd.f32 %v530_v0, %v529_v55  ;;  %v550_v9 = vadd.f32 %v549_v1, %v548_v56  ;;  %v556_v10 = vrot.slane %v555_v2, 2  ;;  %v1295_v11 = vsel %vm1274_vm1, %v524_v63, %v517_v59 }
  0x45   : > { %v538_v12 = vadd.f32 %v537_v3, %v536_v60  ;;  %v544_v13 = vrot.slane %v543_v4, 1  ;;  %v562_v14 = vadd.f32 %v561_v5, %v560_v62  ;;  %v568_v16 = vrot.slane %v567_v7, 4 }
  0x46   : > { %v551_v17 = vrot.slane %v550_v9, 1  ;;  %v557_v18 = vadd.f32 %v556_v10, %v555_v2  ;;  %v1296_v19 = vsel %vm1276_vm2, %v531_v8, %v1295_v11  ;;  %v574_v20 = vsel %vm398_vm0, %v327_v6, 0.0 }
  0x47   : > { %v545_v21 = vadd.f32 %v544_v13, %v543_v4  ;;  %v563_v22 = vrot.slane %v562_v14, 2  ;;  %v1297_v23 = vsel %vm1278_vm3, %v538_v12, %v1296_v19  ;;  %v569_v25 = vadd.f32 %v568_v16, %v567_v7 }
  0x48   : > { %v552_v26 = vadd.f32 %v551_v17, %v550_v9  ;;  %v558_v27 = vrot.slane %v557_v18, 1  ;;  %v575_v28 = vrot.slane %v574_v20, 4  ;;  %v581_v29 = vsel %vm398_vm0, %v328_v15, 0.0 }
  0x49   : > { %v564_v30 = vadd.f32 %v563_v22, %v562_v14  ;;  %v1298_v31 = vsel %vm1280_vm4, %v545_v21, %v1297_v23  ;;  %v570_v34 = vrot.slane %v569_v25, 2  ;;  %v582_v35 = vrot.slane %v581_v29, 4  ;;  %v335_v14 = vld [vmem:[%s2643_s24 + $0x108] sm:$0xff]  ;;  %v336_v23 = vld [vmem:[%s2643_s24 + $0x110] sm:$0xff] }
  0x4a   : > { %v559_v36 = vadd.f32 %v558_v27, %v557_v18  ;;  %v1299_v37 = vsel %vm1282_vm5, %v552_v26, %v1298_v31  ;;  %v576_v38 = vadd.f32 %v575_v28, %v574_v20  ;;  %v588_v39 = vsel %vm398_vm0, %v329_v24, 0.0  ;;  %v337_v31 = vld [vmem:[%s2643_s24 + $0x118] sm:$0xff] }
  0x4b   : > { %v565_v40 = vrot.slane %v564_v30, 1  ;;  %v571_v42 = vadd.f32 %v570_v34, %v569_v25  ;;  %v583_v43 = vadd.f32 %v582_v35, %v581_v29  ;;  %v589_v44 = vrot.slane %v588_v39, 4 }
  0x4c   : > { %v1300_v45 = vsel %vm1284_vm6, %v559_v36, %v1299_v37  ;;  %v577_v46 = vrot.slane %v576_v38, 2  ;;  %v595_v47 = vsel %vm398_vm0, %v330_v32, 0.0  ;;  %v602_v48 = vsel %vm398_vm0, %v331_v33, 0.0  ;;  %v338_v32 = vld [vmem:[%s2643_s24 + $0x120] sm:$0xff] }
  0x4d   : > { %v566_v49 = vadd.f32 %v565_v40, %v564_v30  ;;  %v572_v50 = vrot.slane %v571_v42, 1  ;;  %v584_v51 = vrot.slane %v583_v43, 2  ;;  %v590_v52 = vadd.f32 %v589_v44, %v588_v39 }
  0x4e   : > { %v578_v54 = vadd.f32 %v577_v46, %v576_v38  ;;  %v596_v55 = vrot.slane %v595_v47, 4  ;;  %v603_v56 = vrot.slane %v602_v48, 4  ;;  %v609_v57 = vsel %vm398_vm0, %v332_v41, 0.0 }
  0x4f   : > { %v1301_v59 = vsel %vm1286_vm7, %v566_v49, %v1300_v45  ;;  %v573_v60 = vadd.f32 %v572_v50, %v571_v42  ;;  %v585_v61 = vadd.f32 %v584_v51, %v583_v43  ;;  %v591_v62 = vrot.slane %v590_v52, 2  ;;  %v339_v45 = vld [vmem:[%s2643_s24 + $0x128] sm:$0xff] }
  0x50   : > { %2240 = vmatprep.mubr.msk.f32.mxu0 %vm398_vm0, %v1301_v59  ;;  %v579_v63 = vrot.slane %v578_v54, 1  ;;  %v597_v0 = vadd.f32 %v596_v55, %v595_v47  ;;  %v604_v1 = vadd.f32 %v603_v56, %v602_v48  ;;  %v610_v2 = vrot.slane %v609_v57, 4 }
  0x51   : > { %v586_v3 = vrot.slane %v585_v61, 1  ;;  %v592_v4 = vadd.f32 %v591_v62, %v590_v52  ;;  %v616_v5 = vsel %vm398_vm0, %v333_v53, 0.0  ;;  %v623_v6 = vsel %vm398_vm0, %v334_v58, 0.0  ;;  %v340_v53 = vld [vmem:[%s2643_s24 + $0x130] sm:$0xff] }
  0x52   : > { %v580_v7 = vadd.f32 %v579_v63, %v578_v54  ;;  %v598_v8 = vrot.slane %v597_v0, 2  ;;  %v605_v9 = vrot.slane %v604_v1, 2  ;;  %v611_v10 = vadd.f32 %v610_v2, %v609_v57  ;;  %v341_v54 = vld [vmem:[%s2643_s24 + $0x138] sm:$0xff]  ;;  %v342_v2 = vld [vmem:[%s2643_s24 + $0x140] sm:$0xff] }
  0x53   : > { %v587_v11 = vadd.f32 %v586_v3, %v585_v61  ;;  %v593_v12 = vrot.slane %v592_v4, 1  ;;  %v617_v13 = vrot.slane %v616_v5, 4  ;;  %v624_v15 = vrot.slane %v623_v6, 4 }
  0x54   : > { %v599_v16 = vadd.f32 %v598_v8, %v597_v0  ;;  %v606_v17 = vadd.f32 %v605_v9, %v604_v1  ;;  %v612_v18 = vrot.slane %v611_v10, 2  ;;  %v1302_v19 = vsel %vm1274_vm1, %v580_v7, %v573_v60 }
  0x55   : > { %v594_v20 = vadd.f32 %v593_v12, %v592_v4  ;;  %v618_v21 = vadd.f32 %v617_v13, %v616_v5  ;;  %v1303_v22 = vsel %vm1276_vm2, %v587_v11, %v1302_v19  ;;  %v625_v24 = vadd.f32 %v624_v15, %v623_v6  ;;  %v343_v19 = vld [vmem:[%s2643_s24 + $0x148] sm:$0xff] }
  0x56   : > { %v600_v25 = vrot.slane %v599_v16, 1  ;;  %v607_v26 = vrot.slane %v606_v17, 1  ;;  %v613_v27 = vadd.f32 %v612_v18, %v611_v10  ;;  %v630_v28 = vsel %vm398_vm0, %v335_v14, 0.0 }
  0x57   : > { %v619_v29 = vrot.slane %v618_v21, 2  ;;  %v1304_v30 = vsel %vm1278_vm3, %v594_v20, %v1303_v22  ;;  %v626_v33 = vrot.slane %v625_v24, 2  ;;  %v631_v34 = vrot.slane %v630_v28, 4 }
  0x58   : > { %v601_v35 = vadd.f32 %v600_v25, %v599_v16  ;;  %v608_v36 = vadd.f32 %v607_v26, %v606_v17  ;;  %v614_v37 = vrot.slane %v613_v27, 1  ;;  %v637_v38 = vsel %vm398_vm0, %v336_v23, 0.0 }
  0x59   : > { %v620_v39 = vadd.f32 %v619_v29, %v618_v21  ;;  %v627_v40 = vadd.f32 %v626_v33, %v625_v24  ;;  %v632_v41 = vadd.f32 %v631_v34, %v630_v28  ;;  %v638_v42 = vrot.slane %v637_v38, 4 }
  0x5a   : > { %v615_v43 = vadd.f32 %v614_v37, %v613_v27  ;;  %v1305_v44 = vsel %vm1280_vm4, %v601_v35, %v1304_v30  ;;  %v644_v46 = vsel %vm398_vm0, %v337_v31, 0.0  ;;  %v651_v47 = vsel %vm398_vm0, %v338_v32, 0.0  ;;  %v344_v30 = vld [vmem:[%s2643_s24 + $0x150] sm:$0xff]  ;;  %v345_v31 = vld [vmem:[%s2643_s24 + $0x158] sm:$0xff] }
  0x5b   : > { %v621_v48 = vrot.slane %v620_v39, 1  ;;  %v1306_v49 = vsel %vm1282_vm5, %v608_v36, %v1305_v44  ;;  %v628_v50 = vrot.slane %v627_v40, 1  ;;  %v633_v51 = vrot.slane %v632_v41, 2  ;;  %v346_v44 = vld [vmem:[%s2643_s24 + $0x160] sm:$0xff] }
  0x5c   : > { %v1307_v52 = vsel %vm1284_vm6, %v615_v43, %v1306_v49  ;;  %v639_v55 = vadd.f32 %v638_v42, %v637_v38  ;;  %v645_v56 = vrot.slane %v644_v46, 4  ;;  %v652_v57 = vrot.slane %v651_v47, 4 }
  0x5d   : > { %v622_v58 = vadd.f32 %v621_v48, %v620_v39  ;;  %v629_v59 = vadd.f32 %v628_v50, %v627_v40  ;;  %v634_v60 = vadd.f32 %v633_v51, %v632_v41  ;;  %v658_v61 = vsel %vm398_vm0, %v339_v45, 0.0 }
  0x5e   : > { %v640_v62 = vrot.slane %v639_v55, 2  ;;  %v646_v63 = vadd.f32 %v645_v56, %v644_v46  ;;  %v653_v0 = vadd.f32 %v652_v57, %v651_v47  ;;  %v659_v1 = vrot.slane %v658_v61, 4 }
  0x5f   : > { %v1308_v3 = vsel %vm1286_vm7, %v622_v58, %v1307_v52  ;;  %v635_v4 = vrot.slane %v634_v60, 1  ;;  %v665_v5 = vsel %vm398_vm0, %v340_v53, 0.0  ;;  %v672_v6 = vsel %vm398_vm0, %v341_v54, 0.0  ;;  %v347_v52 = vld [vmem:[%s2643_s24 + $0x168] sm:$0xff]  ;;  %v348_v53 = vld [vmem:[%s2643_s24 + $0x170] sm:$0xff] }
  0x60   : > { %2241 = vmatmul.mubr.msk.f32.gmra.mrb[2].mxu0 %vm398_vm0, %v1308_v3  ;;  %v641_v7 = vadd.f32 %v640_v62, %v639_v55  ;;  %v647_v8 = vrot.slane %v646_v63, 2  ;;  %v654_v9 = vrot.slane %v653_v0, 2  ;;  %v660_v10 = vadd.f32 %v659_v1, %v658_v61  ;;  %v349_v61 = vld [vmem:[%s2643_s24 + $0x178] sm:$0xff] }
  0x61   : > { %v636_v11 = vadd.f32 %v635_v4, %v634_v60  ;;  %v666_v12 = vrot.slane %v665_v5, 4  ;;  %v673_v13 = vrot.slane %v672_v6, 4  ;;  %v679_v14 = vsel %vm398_vm0, %v342_v2, 0.0 }
  0x62   : > { %v642_v15 = vrot.slane %v641_v7, 1  ;;  %v648_v16 = vadd.f32 %v647_v8, %v646_v63  ;;  %v655_v17 = vadd.f32 %v654_v9, %v653_v0  ;;  %v661_v18 = vrot.slane %v660_v10, 2 }
  0x63   : > { %v667_v20 = vadd.f32 %v666_v12, %v665_v5  ;;  %v674_v21 = vadd.f32 %v673_v13, %v672_v6  ;;  %v1309_v22 = vsel %vm1274_vm1, %v636_v11, %v629_v59  ;;  %v680_v23 = vrot.slane %v679_v14, 4 }
  0x64   : > { %v643_v24 = vadd.f32 %v642_v15, %v641_v7  ;;  %v649_v25 = vrot.slane %v648_v16, 1  ;;  %v656_v26 = vrot.slane %v655_v17, 1  ;;  %v662_v27 = vadd.f32 %v661_v18, %v660_v10  ;;  %v350_v10 = vld [vmem:[%s2643_s24 + $0x180] sm:$0xff] }
  0x65   : > { %v668_v28 = vrot.slane %v667_v20, 2  ;;  %v675_v29 = vrot.slane %v674_v21, 2  ;;  %v681_v32 = vadd.f32 %v680_v23, %v679_v14  ;;  %v686_v33 = vsel %vm398_vm0, %v343_v19, 0.0 }
  0x66   : > { %v650_v34 = vadd.f32 %v649_v25, %v648_v16  ;;  %v657_v35 = vadd.f32 %v656_v26, %v655_v17  ;;  %v663_v36 = vrot.slane %v662_v27, 1  ;;  %v1310_v37 = vsel %vm1276_vm2, %v643_v24, %v1309_v22 }
  0x67   : > { %v669_v38 = vadd.f32 %v668_v28, %v667_v20  ;;  %v676_v39 = vadd.f32 %v675_v29, %v674_v21  ;;  %v682_v40 = vrot.slane %v681_v32, 2  ;;  %v687_v41 = vrot.slane %v686_v33, 4 }
  0x68   : > { %v664_v42 = vadd.f32 %v663_v36, %v662_v27  ;;  %v1311_v43 = vsel %vm1278_vm3, %v650_v34, %v1310_v37  ;;  %v693_v45 = vsel %vm398_vm0, %v344_v30, 0.0  ;;  %v700_v46 = vsel %vm398_vm0, %v345_v31, 0.0  ;;  %v351_v30 = vld [vmem:[%s2643_s24 + $0x188] sm:$0xff]  ;;  %v352_v31 = vld [vmem:[%s2643_s24 + $0x190] sm:$0xff] }
  0x69   : > { %v670_v47 = vrot.slane %v669_v38, 1  ;;  %v677_v48 = vrot.slane %v676_v39, 1  ;;  %v1312_v49 = vsel %vm1280_vm4, %v657_v35, %v1311_v43  ;;  %v683_v50 = vadd.f32 %v682_v40, %v681_v32  ;;  %v353_v43 = vld [vmem:[%s2643_s24 + $0x198] sm:$0xff] }
  0x6a   : > { %v1313_v51 = vsel %vm1282_vm5, %v664_v42, %v1312_v49  ;;  %v688_v54 = vadd.f32 %v687_v41, %v686_v33  ;;  %v694_v55 = vrot.slane %v693_v45, 4  ;;  %v701_v56 = vrot.slane %v700_v46, 4 }
  0x6b   : > { %v671_v57 = vadd.f32 %v670_v47, %v669_v38  ;;  %v678_v58 = vadd.f32 %v677_v48, %v676_v39  ;;  %v684_v59 = vrot.slane %v683_v50, 1  ;;  %v707_v60 = vsel %vm398_vm0, %v346_v44, 0.0 }
  0x6c   : > { %v689_v62 = vrot.slane %v688_v54, 2  ;;  %v695_v63 = vadd.f32 %v694_v55, %v693_v45  ;;  %v702_v0 = vadd.f32 %v701_v56, %v700_v46  ;;  %v708_v1 = vrot.slane %v707_v60, 4 }
  0x6d   : > { %v1314_v2 = vsel %vm1284_vm6, %v671_v57, %v1313_v51  ;;  %v685_v3 = vadd.f32 %v684_v59, %v683_v50  ;;  %v714_v4 = vsel %vm398_vm0, %v347_v52, 0.0  ;;  %v721_v5 = vsel %vm398_vm0, %v348_v53, 0.0  ;;  %v354_v51 = vld [vmem:[%s2643_s24 + $0x1a0] sm:$0xff]  ;;  %v355_v52 = vld [vmem:[%s2643_s24 + $0x1a8] sm:$0xff] }
  0x6e   : > { %v1315_v6 = vsel %vm1286_vm7, %v678_v58, %v1314_v2  ;;  %v690_v7 = vadd.f32 %v689_v62, %v688_v54  ;;  %v696_v8 = vrot.slane %v695_v63, 2  ;;  %v703_v9 = vrot.slane %v702_v0, 2 }
  0x6f   : > { %2243 = vmatprep.mubr.msk.f32.mxu0 %vm398_vm0, %v1315_v6  ;;  %v709_v11 = vadd.f32 %v708_v1, %v707_v60  ;;  %v715_v12 = vrot.slane %v714_v4, 4  ;;  %v722_v13 = vrot.slane %v721_v5, 4  ;;  %v728_v14 = vsel %vm398_vm0, %v349_v61, 0.0  ;;  %v356_v1 = vld [vmem:[%s2643_s24 + $0x1b0] sm:$0xff] }
  0x70   : > { %v691_v15 = vrot.slane %v690_v7, 1  ;;  %v697_v16 = vadd.f32 %v696_v8, %v695_v63  ;;  %v704_v17 = vadd.f32 %v703_v9, %v702_v0  ;;  %v729_v18 = vrot.slane %v728_v14, 4 }
  0x71   : > { %v710_v19 = vrot.slane %v709_v11, 2  ;;  %v716_v20 = vadd.f32 %v715_v12, %v714_v4  ;;  %v723_v21 = vadd.f32 %v722_v13, %v721_v5  ;;  %v735_v22 = vsel %vm398_vm0, %v350_v10, 0.0  ;;  %v357_v10 = vld [vmem:[%s2643_s24 + $0x1b8] sm:$0xff] }
  0x72   : > { %v692_v23 = vadd.f32 %v691_v15, %v690_v7  ;;  %v698_v24 = vrot.slane %v697_v16, 1  ;;  %v705_v25 = vrot.slane %v704_v17, 1  ;;  %v730_v26 = vadd.f32 %v729_v18, %v728_v14  ;;  %v358_v14 = vld [vmem:[%s2643_s24 + $0x1c0] sm:$0xff] }
  0x73   : > { %v711_v27 = vadd.f32 %v710_v19, %v709_v11  ;;  %v717_v28 = vrot.slane %v716_v20, 2  ;;  %v724_v29 = vrot.slane %v723_v21, 2  ;;  %v736_v32 = vrot.slane %v735_v22, 4 }
  0x74   : > { %v699_v33 = vadd.f32 %v698_v24, %v697_v16  ;;  %v706_v34 = vadd.f32 %v705_v25, %v704_v17  ;;  %v731_v35 = vrot.slane %v730_v26, 2  ;;  %v1316_v36 = vsel %vm1274_vm1, %v692_v23, %v685_v3 }
  0x75   : > { %v712_v37 = vrot.slane %v711_v27, 1  ;;  %v718_v38 = vadd.f32 %v717_v28, %v716_v20  ;;  %v725_v39 = vadd.f32 %v724_v29, %v723_v21  ;;  %v737_v40 = vadd.f32 %v736_v32, %v735_v22 }
  0x76   : > { %v732_v41 = vadd.f32 %v731_v35, %v730_v26  ;;  %v1317_v42 = vsel %vm1276_vm2, %v699_v33, %v1316_v36  ;;  %v742_v44 = vsel %vm398_vm0, %v351_v30, 0.0  ;;  %v749_v45 = vsel %vm398_vm0, %v352_v31, 0.0  ;;  %v359_v31 = vld [vmem:[%s2643_s24 + $0x1c8] sm:$0xff] }
  0x77   : > { %v713_v46 = vadd.f32 %v712_v37, %v711_v27  ;;  %v719_v47 = vrot.slane %v718_v38, 1  ;;  %v726_v48 = vrot.slane %v725_v39, 1  ;;  %v1318_v49 = vsel %vm1278_vm3, %v706_v34, %v1317_v42 }
  0x78   : > { %v733_v50 = vrot.slane %v732_v41, 1  ;;  %v738_v53 = vrot.slane %v737_v40, 2  ;;  %v743_v54 = vrot.slane %v742_v44, 4  ;;  %v750_v55 = vrot.slane %v749_v45, 4 }
  0x79   : > { %v720_v56 = vadd.f32 %v719_v47, %v718_v38  ;;  %v727_v57 = vadd.f32 %v726_v48, %v725_v39  ;;  %v1319_v58 = vsel %vm1280_vm4, %v713_v46, %v1318_v49  ;;  %v756_v59 = vsel %vm398_vm0, %v353_v43, 0.0  ;;  %v360_v48 = vld [vmem:[%s2643_s24 + $0x1d0] sm:$0xff] }
  0x7a   : > { %v734_v60 = vadd.f32 %v733_v50, %v732_v41  ;;  %v739_v61 = vadd.f32 %v738_v53, %v737_v40  ;;  %v744_v62 = vadd.f32 %v743_v54, %v742_v44  ;;  %v751_v63 = vadd.f32 %v750_v55, %v749_v45 }
  0x7b   : > { %v1320_v0 = vsel %vm1282_vm5, %v720_v56, %v1319_v58  ;;  %v757_v2 = vrot.slane %v756_v59, 4  ;;  %v763_v3 = vsel %vm398_vm0, %v354_v51, 0.0  ;;  %v770_v4 = vsel %vm398_vm0, %v355_v52, 0.0  ;;  %v361_v51 = vld [vmem:[%s2643_s24 + $0x1d8] sm:$0xff] }
  0x7c   : > { %v1321_v5 = vsel %vm1284_vm6, %v727_v57, %v1320_v0  ;;  %v740_v6 = vrot.slane %v739_v61, 1  ;;  %v745_v7 = vrot.slane %v744_v62, 2  ;;  %v752_v8 = vrot.slane %v751_v63, 2 }
  0x7d   : > { %v1322_v9 = vsel %vm1286_vm7, %v734_v60, %v1321_v5  ;;  %v758_v11 = vadd.f32 %v757_v2, %v756_v59  ;;  %v764_v12 = vrot.slane %v763_v3, 4  ;;  %v771_v13 = vrot.slane %v770_v4, 4  ;;  %v362_v59 = vld [vmem:[%s2643_s24 + $0x1e0] sm:$0xff]  ;;  %v363_v5 = vld [vmem:[%s2643_s24 + $0x1e8] sm:$0xff] }
  0x7e   : > { %2244 = vmatmul.mubr.msk.f32.gmra.mrb[4].mxu0 %vm398_vm0, %v1322_v9  ;;  %v741_v15 = vadd.f32 %v740_v6, %v739_v61  ;;  %v746_v16 = vadd.f32 %v745_v7, %v744_v62  ;;  %v753_v17 = vadd.f32 %v752_v8, %v751_v63  ;;  %v777_v18 = vsel %vm398_vm0, %v356_v1, 0.0  ;;  %v364_v6 = vld [vmem:[%s2643_s24 + $0x1f0] sm:$0xff] }
  0x7f   : > { %v759_v19 = vrot.slane %v758_v11, 2  ;;  %v765_v20 = vadd.f32 %v764_v12, %v763_v3  ;;  %v772_v21 = vadd.f32 %v771_v13, %v770_v4  ;;  %v778_v22 = vrot.slane %v777_v18, 4 }
  0x80   : > { %v747_v23 = vrot.slane %v746_v16, 1  ;;  %v754_v24 = vrot.slane %v753_v17, 1  ;;  %v784_v25 = vsel %vm398_vm0, %v357_v10, 0.0  ;;  %v791_v26 = vsel %vm398_vm0, %v358_v14, 0.0  ;;  %v365_v14 = vld [vmem:[%s2643_s24 + $0x1f8] sm:$0xff] }
  0x81   : > { %v760_v27 = vadd.f32 %v759_v19, %v758_v11  ;;  %v766_v28 = vrot.slane %v765_v20, 2  ;;  %v773_v29 = vrot.slane %v772_v21, 2  ;;  %v779_v30 = vadd.f32 %v778_v22, %v777_v18 }
  0x82   : > { %v748_v32 = vadd.f32 %v747_v23, %v746_v16  ;;  %v755_v33 = vadd.f32 %v754_v24, %v753_v17  ;;  %v785_v34 = vrot.slane %v784_v25, 4  ;;  %v792_v35 = vrot.slane %v791_v26, 4 }
  0x83   : > { %v761_v36 = vrot.slane %v760_v27, 1  ;;  %v767_v37 = vadd.f32 %v766_v28, %v765_v20  ;;  %v774_v38 = vadd.f32 %v773_v29, %v772_v21  ;;  %v780_v39 = vrot.slane %v779_v30, 2 }
  0x84   : > { %v786_v40 = vadd.f32 %v785_v34, %v784_v25  ;;  %v1323_v41 = vsel %vm1274_vm1, %v748_v32, %v741_v15  ;;  %v793_v42 = vadd.f32 %v792_v35, %v791_v26  ;;  %v798_v43 = vsel %vm398_vm0, %v359_v31, 0.0  ;;  %v366_v26 = vld [vmem:[%s2643_s24 + $0x200] sm:$0xff] }
  0x85   : > { %v762_v44 = vadd.f32 %v761_v36, %v760_v27  ;;  %v768_v45 = vrot.slane %v767_v37, 1  ;;  %v775_v46 = vrot.slane %v774_v38, 1  ;;  %v781_v47 = vadd.f32 %v780_v39, %v779_v30 }
  0x86   : > { %v787_v49 = vrot.slane %v786_v40, 2  ;;  %v1324_v50 = vsel %vm1276_vm2, %v755_v33, %v1323_v41  ;;  %v794_v52 = vrot.slane %v793_v42, 2  ;;  %v799_v53 = vrot.slane %v798_v43, 4 }
  0x87   : > { %v769_v54 = vadd.f32 %v768_v45, %v767_v37  ;;  %v776_v55 = vadd.f32 %v775_v46, %v774_v38  ;;  %v782_v56 = vrot.slane %v781_v47, 1  ;;  %v1325_v57 = vsel %vm1278_vm3, %v762_v44, %v1324_v50  ;;  %v367_v38 = vld [vmem:[%s2643_s24 + $0x208] sm:$0xff] }
  0x88   : > { %v788_v58 = vadd.f32 %v787_v49, %v786_v40  ;;  %v795_v60 = vadd.f32 %v794_v52, %v793_v42  ;;  %v800_v61 = vadd.f32 %v799_v53, %v798_v43  ;;  %v805_v62 = vsel %vm398_vm0, %v360_v48, 0.0 }
  0x89   : > { %v783_v63 = vadd.f32 %v782_v56, %v781_v47  ;;  %v1326_v0 = vsel %vm1280_vm4, %v769_v54, %v1325_v57  ;;  %v806_v1 = vrot.slane %v805_v62, 4  ;;  %v812_v2 = vsel %vm398_vm0, %v361_v51, 0.0  ;;  %v368_v51 = vld [vmem:[%s2643_s24 + $0x210] sm:$0xff] }
  0x8a   : > { %v789_v3 = vrot.slane %v788_v58, 1  ;;  %v1327_v4 = vsel %vm1282_vm5, %v776_v55, %v1326_v0  ;;  %v796_v7 = vrot.slane %v795_v60, 1  ;;  %v801_v8 = vrot.slane %v800_v61, 2 }
  0x8b   : > { %v1328_v9 = vsel %vm1284_vm6, %v783_v63, %v1327_v4  ;;  %v807_v10 = vadd.f32 %v806_v1, %v805_v62  ;;  %v813_v11 = vrot.slane %v812_v2, 4  ;;  %v819_v12 = vsel %vm398_vm0, %v362_v59, 0.0 }
  0x8c   : > { %v790_v13 = vadd.f32 %v789_v3, %v788_v58  ;;  %v797_v15 = vadd.f32 %v796_v7, %v795_v60  ;;  %v802_v16 = vadd.f32 %v801_v8, %v800_v61  ;;  %v820_v17 = vrot.slane %v819_v12, 4  ;;  %v369_v60 = vld [vmem:[%s2643_s24 + $0x218] sm:$0xff] }
  0x8d   : > { %v808_v18 = vrot.slane %v807_v10, 2  ;;  %v814_v19 = vadd.f32 %v813_v11, %v812_v2  ;;  %v826_v20 = vsel %vm398_vm0, %v363_v5, 0.0  ;;  %v833_v21 = vsel %vm398_vm0, %v364_v6, 0.0  ;;  %v370_v5 = vld [vmem:[%s2643_s24 + $0x220] sm:$0xff] }
  0x8e   : > { %v1329_v22 = vsel %vm1286_vm7, %v790_v13, %v1328_v9  ;;  %v803_v23 = vrot.slane %v802_v16, 1  ;;  %v821_v24 = vadd.f32 %v820_v17, %v819_v12  ;;  %v827_v25 = vrot.slane %v826_v20, 4  ;;  %v371_v13 = vld [vmem:[%s2643_s24 + $0x228] sm:$0xff] }
  0x8f   : > { %2246 = vmatprep.mubr.msk.f32.mxu0 %vm398_vm0, %v1329_v22  ;;  %v809_v27 = vadd.f32 %v808_v18, %v807_v10  ;;  %v815_v28 = vrot.slane %v814_v19, 2  ;;  %v834_v29 = vrot.slane %v833_v21, 4  ;;  %v840_v30 = vsel %vm398_vm0, %v365_v14, 0.0  ;;  %v372_v14 = vld [vmem:[%s2643_s24 + $0x230] sm:$0xff]  ;;  %v373_v22 = vld [vmem:[%s2643_s24 + $0x238] sm:$0xff] }
  0x90   : > { %v804_v31 = vadd.f32 %v803_v23, %v802_v16  ;;  %v822_v32 = vrot.slane %v821_v24, 2  ;;  %v828_v33 = vadd.f32 %v827_v25, %v826_v20  ;;  %v841_v34 = vrot.slane %v840_v30, 4 }
  0x91   : > { %v810_v35 = vrot.slane %v809_v27, 1  ;;  %v816_v36 = vadd.f32 %v815_v28, %v814_v19  ;;  %v835_v37 = vadd.f32 %v834_v29, %v833_v21  ;;  %v847_v39 = vsel %vm398_vm0, %v366_v26, 0.0  ;;  %v374_v26 = vld [vmem:[%s2643_s24 + $0x240] sm:$0xff] }
  0x92   : > { %v823_v40 = vadd.f32 %v822_v32, %v821_v24  ;;  %v829_v41 = vrot.slane %v828_v33, 2  ;;  %v842_v42 = vadd.f32 %v841_v34, %v840_v30  ;;  %v1330_v43 = vsel %vm1274_vm1, %v804_v31, %v797_v15 }
  0x93   : > { %v811_v44 = vadd.f32 %v810_v35, %v809_v27  ;;  %v817_v45 = vrot.slane %v816_v36, 1  ;;  %v836_v46 = vrot.slane %v835_v37, 2  ;;  %v848_v47 = vrot.slane %v847_v39, 4 }
  0x94   : > { %v824_v48 = vrot.slane %v823_v40, 1  ;;  %v830_v49 = vadd.f32 %v829_v41, %v828_v33  ;;  %v843_v50 = vrot.slane %v842_v42, 2  ;;  %v854_v52 = vsel %vm398_vm0, %v367_v38, 0.0 }
  0x95   : > { %v818_v53 = vadd.f32 %v817_v45, %v816_v36  ;;  %v837_v54 = vadd.f32 %v836_v46, %v835_v37  ;;  %v1331_v55 = vsel %vm1276_vm2, %v811_v44, %v1330_v43  ;;  %v849_v56 = vadd.f32 %v848_v47, %v847_v39  ;;  %v375_v46 = vld [vmem:[%s2643_s24 + $0x248] sm:$0xff] }
  0x96   : > { %v825_v57 = vadd.f32 %v824_v48, %v823_v40  ;;  %v831_v58 = vrot.slane %v830_v49, 1  ;;  %v844_v59 = vadd.f32 %v843_v50, %v842_v42  ;;  %v855_v61 = vrot.slane %v854_v52, 4 }
  0x97   : > { %v838_v62 = vrot.slane %v837_v54, 1  ;;  %v1332_v63 = vsel %vm1278_vm3, %v818_v53, %v1331_v55  ;;  %v850_v0 = vrot.slane %v849_v56, 2  ;;  %v861_v1 = vsel %vm398_vm0, %v368_v51, 0.0 }
  0x98   : > { %v832_v2 = vadd.f32 %v831_v58, %v830_v49  ;;  %v845_v3 = vrot.slane %v844_v59, 1  ;;  %v1333_v4 = vsel %vm1280_vm4, %v825_v57, %v1332_v63  ;;  %v856_v6 = vadd.f32 %v855_v61, %v854_v52 }
  0x99   : > { %v839_v7 = vadd.f32 %v838_v62, %v837_v54  ;;  %v851_v8 = vadd.f32 %v850_v0, %v849_v56  ;;  %v862_v9 = vrot.slane %v861_v1, 4  ;;  %v868_v10 = vsel %vm398_vm0, %v369_v60, 0.0 }
  0x9a   : > { %v846_v11 = vadd.f32 %v845_v3, %v844_v59  ;;  %v1334_v12 = vsel %vm1282_vm5, %v832_v2, %v1333_v4  ;;  %v857_v15 = vrot.slane %v856_v6, 2  ;;  %v869_v16 = vrot.slane %v868_v10, 4  ;;  %v376_v59 = vld [vmem:[%s2643_s24 + $0x250] sm:$0xff]  ;;  %v377_v4 = vld [vmem:[%s2643_s24 + $0x258] sm:$0xff] }
  0x9b   : > { %v1335_v17 = vsel %vm1284_vm6, %v839_v7, %v1334_v12  ;;  %v852_v18 = vrot.slane %v851_v8, 1  ;;  %v863_v19 = vadd.f32 %v862_v9, %v861_v1  ;;  %v875_v20 = vsel %vm398_vm0, %v370_v5, 0.0  ;;  %v378_v12 = vld [vmem:[%s2643_s24 + $0x260] sm:$0xff] }
  0x9c   : > { %v1336_v21 = vsel %vm1286_vm7, %v846_v11, %v1335_v17  ;;  %v858_v23 = vadd.f32 %v857_v15, %v856_v6  ;;  %v870_v24 = vadd.f32 %v869_v16, %v868_v10  ;;  %v876_v25 = vrot.slane %v875_v20, 4 }
  0x9d   : > { %2247 = vmatmul.mubr.msk.f32.gmra.mrb[6].mxu0 %vm398_vm0, %v1336_v21  ;;  %v853_v27 = vadd.f32 %v852_v18, %v851_v8  ;;  %v864_v28 = vrot.slane %v863_v19, 2  ;;  %v882_v29 = vsel %vm398_vm0, %v371_v13, 0.0  ;;  %v889_v30 = vsel %vm398_vm0, %v372_v14, 0.0  ;;  %v380_v21 = vld [vmem:[%s2643_s24 + $0x270] sm:$0xff] }
  0x9e   : > { %v859_v31 = vrot.slane %v858_v23, 1  ;;  %v871_v32 = vrot.slane %v870_v24, 2  ;;  %v877_v33 = vadd.f32 %v876_v25, %v875_v20  ;;  %v883_v34 = vrot.slane %v882_v29, 4  ;;  %v379_v20 = vld [vmem:[%s2643_s24 + $0x268] sm:$0xff] }
  0x9f   : > { %v865_v35 = vadd.f32 %v864_v28, %v863_v19  ;;  %v890_v36 = vrot.slane %v889_v30, 4  ;;  %v896_v37 = vsel %vm398_vm0, %v373_v22, 0.0  ;;  %v903_v38 = vsel %vm398_vm0, %v374_v26, 0.0  ;;  %v381_v22 = vld [vmem:[%s2643_s24 + $0x278] sm:$0xff] }
  0xa0   : > { %v860_v39 = vadd.f32 %v859_v31, %v858_v23  ;;  %v872_v40 = vadd.f32 %v871_v32, %v870_v24  ;;  %v878_v41 = vrot.slane %v877_v33, 2  ;;  %v884_v42 = vadd.f32 %v883_v34, %v882_v29  ;;  %v382_v34 = vld [vmem:[%s2643_s24 + $0x280] sm:$0xff] }
  0xa1   : > { %v866_v43 = vrot.slane %v865_v35, 1  ;;  %v891_v44 = vadd.f32 %v890_v36, %v889_v30  ;;  %v897_v45 = vrot.slane %v896_v37, 4  ;;  %v904_v47 = vrot.slane %v903_v38, 4 }
  0xa2   : > { %v873_v48 = vrot.slane %v872_v40, 1  ;;  %v879_v49 = vadd.f32 %v878_v41, %v877_v33  ;;  %v885_v50 = vrot.slane %v884_v42, 2  ;;  %v1337_v51 = vsel %vm1274_vm1, %v860_v39, %v853_v27 }
  0xa3   : > { %v867_v52 = vadd.f32 %v866_v43, %v865_v35  ;;  %v892_v53 = vrot.slane %v891_v44, 2  ;;  %v898_v54 = vadd.f32 %v897_v45, %v896_v37  ;;  %v905_v55 = vadd.f32 %v904_v47, %v903_v38 }
  0xa4   : > { %v874_v56 = vadd.f32 %v873_v48, %v872_v40  ;;  %v880_v57 = vrot.slane %v879_v49, 1  ;;  %v886_v58 = vadd.f32 %v885_v50, %v884_v42  ;;  %v910_v60 = vsel %vm398_vm0, %v375_v46, 0.0 }
  0xa5   : > { %v893_v61 = vadd.f32 %v892_v53, %v891_v44  ;;  %v899_v62 = vrot.slane %v898_v54, 2  ;;  %v1338_v63 = vsel %vm1276_vm2, %v867_v52, %v1337_v51  ;;  %v906_v0 = vrot.slane %v905_v55, 2 }
  0xa6   : > { %v881_v1 = vadd.f32 %v880_v57, %v879_v49  ;;  %v887_v2 = vrot.slane %v886_v58, 1  ;;  %v1339_v3 = vsel %vm1278_vm3, %v874_v56, %v1338_v63  ;;  %v911_v5 = vrot.slane %v910_v60, 4  ;;  %v384_v63 = vld [vmem:[%s2643_s24 + $0x290] sm:$0xff] }
  0xa7   : > { %v894_v6 = vrot.slane %v893_v61, 1  ;;  %v900_v7 = vadd.f32 %v899_v62, %v898_v54  ;;  %v907_v8 = vadd.f32 %v906_v0, %v905_v55  ;;  %v917_v9 = vsel %vm398_vm0, %v376_v59, 0.0  ;;  %v383_v54 = vld [vmem:[%s2643_s24 + $0x288] sm:$0xff] }
  0xa8   : > { %v888_v10 = vadd.f32 %v887_v2, %v886_v58  ;;  %v1340_v11 = vsel %vm1280_vm4, %v881_v1, %v1339_v3  ;;  %v912_v13 = vadd.f32 %v911_v5, %v910_v60  ;;  %v918_v14 = vrot.slane %v917_v9, 4 }
  0xa9   : > { %v895_v15 = vadd.f32 %v894_v6, %v893_v61  ;;  %v901_v16 = vrot.slane %v900_v7, 1  ;;  %v908_v17 = vrot.slane %v907_v8, 1  ;;  %v924_v18 = vsel %vm398_vm0, %v377_v4, 0.0 }
  0xaa   : > { %v1341_v19 = vsel %vm1282_vm5, %v888_v10, %v1340_v11  ;;  %v913_v23 = vrot.slane %v912_v13, 2  ;;  %v919_v24 = vadd.f32 %v918_v14, %v917_v9  ;;  %v925_v25 = vrot.slane %v924_v18, 4 }
  0xab   : > { %v902_v26 = vadd.f32 %v901_v16, %v900_v7  ;;  %v1342_v27 = vsel %vm1284_vm6, %v895_v15, %v1341_v19  ;;  %v909_v28 = vadd.f32 %v908_v17, %v907_v8  ;;  %v931_v29 = vsel %vm398_vm0, %v378_v12, 0.0  ;;  %v385_v8 = vld [vmem:[%s2643_s24 + $0x298] sm:$0xff]  ;;  %v386_v17 = vld [vmem:[%s2643_s24 + $0x2a0] sm:$0xff] }
  0xac   : > { %v914_v30 = vadd.f32 %v913_v23, %v912_v13  ;;  %v920_v31 = vrot.slane %v919_v24, 2  ;;  %v926_v32 = vadd.f32 %v925_v25, %v924_v18  ;;  %v932_v33 = vrot.slane %v931_v29, 4 }
  0xad   : > { %v1343_v35 = vsel %vm1286_vm7, %v902_v26, %v1342_v27  ;;  %v938_v36 = vsel %vm398_vm0, %v379_v20, 0.0  ;;  %v945_v37 = vsel %vm398_vm0, %v380_v21, 0.0  ;;  %v952_v38 = vsel %vm398_vm0, %v381_v22, 0.0  ;;  %v387_v20 = vld [vmem:[%s2643_s24 + $0x2a8] sm:$0xff] }
  0xae   : > { %2249 = vmatprep.mubr.msk.f32.mxu0 %vm398_vm0, %v1343_v35  ;;  %v915_v39 = vrot.slane %v914_v30, 1  ;;  %v921_v40 = vadd.f32 %v920_v31, %v919_v24  ;;  %v927_v41 = vrot.slane %v926_v32, 2  ;;  %v933_v42 = vadd.f32 %v932_v33, %v931_v29 }
  0xaf   : > { %v939_v43 = vrot.slane %v938_v36, 4  ;;  %v946_v44 = vrot.slane %v945_v37, 4  ;;  %v953_v45 = vrot.slane %v952_v38, 4  ;;  %v959_v46 = vsel %vm398_vm0, %v382_v34, 0.0 }
  0xb0   : > { %v916_v47 = vadd.f32 %v915_v39, %v914_v30  ;;  %v922_v48 = vrot.slane %v921_v40, 1  ;;  %v928_v49 = vadd.f32 %v927_v41, %v926_v32  ;;  %v934_v50 = vrot.slane %v933_v42, 2 }
  0xb1   : > { %v940_v51 = vadd.f32 %v939_v43, %v938_v36  ;;  %v947_v52 = vadd.f32 %v946_v44, %v945_v37  ;;  %v954_v53 = vadd.f32 %v953_v45, %v952_v38  ;;  %v960_v55 = vrot.slane %v959_v46, 4  ;;  %v389_v38 = vld [vmem:[%s2643_s24 + $0x2b8] sm:$0xff] }
  0xb2   : > { %v923_v56 = vadd.f32 %v922_v48, %v921_v40  ;;  %v929_v57 = vrot.slane %v928_v49, 1  ;;  %v935_v58 = vadd.f32 %v934_v50, %v933_v42  ;;  %v1344_v59 = vsel %vm1274_vm1, %v916_v47, %v909_v28  ;;  %v388_v28 = vld [vmem:[%s2643_s24 + $0x2b0] sm:$0xff]  ;;  %v390_v42 = vld [vmem:[%s2643_s24 + $0x2c0] sm:$0xff] }
  0xb3   : > { %v941_v60 = vrot.slane %v940_v51, 2  ;;  %v948_v61 = vrot.slane %v947_v52, 2  ;;  %v955_v62 = vrot.slane %v954_v53, 2  ;;  %v961_v0 = vadd.f32 %v960_v55, %v959_v46 }
  0xb4   : > { %v930_v1 = vadd.f32 %v929_v57, %v928_v49  ;;  %v936_v2 = vrot.slane %v935_v58, 1  ;;  %v1345_v3 = vsel %vm1276_vm2, %v923_v56, %v1344_v59  ;;  %v966_v4 = vsel %vm398_vm0, %v383_v54, 0.0 }
  0xb5   : > { %v942_v5 = vadd.f32 %v941_v60, %v940_v51  ;;  %v949_v6 = vadd.f32 %v948_v61, %v947_v52  ;;  %v956_v7 = vadd.f32 %v955_v62, %v954_v53  ;;  %v962_v9 = vrot.slane %v961_v0, 2  ;;  %v391_v62 = vld [vmem:[%s2643_s24 + $0x2c8] sm:$0xff] }
  0xb6   : > { %v937_v10 = vadd.f32 %v936_v2, %v935_v58  ;;  %v1346_v11 = vsel %vm1278_vm3, %v930_v1, %v1345_v3  ;;  %v967_v12 = vrot.slane %v966_v4, 4  ;;  %v973_v13 = vsel %vm398_vm0, %v384_v63, 0.0 }
  0xb7   : > { %v943_v14 = vrot.slane %v942_v5, 1  ;;  %v950_v15 = vrot.slane %v949_v6, 1  ;;  %v957_v16 = vrot.slane %v956_v7, 1  ;;  %v963_v18 = vadd.f32 %v962_v9, %v961_v0 }
  0xb8   : > { %v1347_v19 = vsel %vm1280_vm4, %v937_v10, %v1346_v11  ;;  %v968_v21 = vadd.f32 %v967_v12, %v966_v4  ;;  %v974_v22 = vrot.slane %v973_v13, 4  ;;  %v980_v23 = vsel %vm398_vm0, %v385_v8, 0.0 }
  0xb9   : > { %v944_v24 = vadd.f32 %v943_v14, %v942_v5  ;;  %v951_v25 = vadd.f32 %v950_v15, %v949_v6  ;;  %v958_v26 = vadd.f32 %v957_v16, %v956_v7  ;;  %v964_v27 = vrot.slane %v963_v18, 1  ;;  %v392_v7 = vld [vmem:[%s2643_s24 + $0x2d0] sm:$0xff]  ;;  %v393_v16 = vld [vmem:[%s2643_s24 + $0x2d8] sm:$0xff] }
  0xba   : > { %v969_v29 = vrot.slane %v968_v21, 2  ;;  %v975_v30 = vadd.f32 %v974_v22, %v973_v13  ;;  %v981_v31 = vrot.slane %v980_v23, 4  ;;  %v987_v32 = vsel %vm398_vm0, %v386_v17, 0.0 }
  0xbb   : > { %v1348_v33 = vsel %vm1282_vm5, %v944_v24, %v1347_v19  ;;  %v965_v34 = vadd.f32 %v964_v27, %v963_v18  ;;  %v988_v35 = vrot.slane %v987_v32, 4  ;;  %v994_v36 = vsel %vm398_vm0, %v387_v20, 0.0 }
  0xbc   : > { %v1349_v37 = vsel %vm1284_vm6, %v951_v25, %v1348_v33  ;;  %v970_v39 = vadd.f32 %v969_v29, %v968_v21  ;;  %v976_v40 = vrot.slane %v975_v30, 2  ;;  %v982_v41 = vadd.f32 %v981_v31, %v980_v23  ;;  %v394_v25 = vld [vmem:[%s2643_s24 + $0x2e0] sm:$0xff]  ;;  %v395_v33 = vld [vmem:[%s2643_s24 + $0x2e8] sm:$0xff] }
  0xbd   : > { %v1350_v43 = vsel %vm1286_vm7, %v958_v26, %v1349_v37  ;;  %v989_v44 = vadd.f32 %v988_v35, %v987_v32  ;;  %v995_v45 = vrot.slane %v994_v36, 4  ;;  %v1001_v46 = vsel %vm398_vm0, %v388_v28, 0.0 }
  0xbe   : > { %2250 = vmatmul.mubr.msk.f32.gmra.mrb[8].mxu0 %vm398_vm0, %v1350_v43  ;;  %v971_v47 = vrot.slane %v970_v39, 1  ;;  %v977_v48 = vadd.f32 %v976_v40, %v975_v30  ;;  %v983_v49 = vrot.slane %v982_v41, 2  ;;  %v1002_v50 = vrot.slane %v1001_v46, 4 }
  0xbf   : > { %v990_v51 = vrot.slane %v989_v44, 2  ;;  %v996_v52 = vadd.f32 %v995_v45, %v994_v36  ;;  %v1008_v53 = vsel %vm398_vm0, %v389_v38, 0.0  ;;  %v1015_v54 = vsel %vm398_vm0, %v390_v42, 0.0  ;;  %v397_v42 = vld [vmem:[%s2643_s24 + $0x2f8] sm:$0xff] }
  0xc0   : > { %v972_v55 = vadd.f32 %v971_v47, %v970_v39  ;;  %v978_v56 = vrot.slane %v977_v48, 1  ;;  %v984_v57 = vadd.f32 %v983_v49, %v982_v41  ;;  %v1003_v58 = vadd.f32 %v1002_v50, %v1001_v46 }
  0xc1   : > { %v991_v59 = vadd.f32 %v990_v51, %v989_v44  ;;  %v997_v60 = vrot.slane %v996_v52, 2  ;;  %v1009_v61 = vrot.slane %v1008_v53, 4  ;;  %v1016_v63 = vrot.slane %v1015_v54, 4 }
  0xc2   : > { %v979_v0 = vadd.f32 %v978_v56, %v977_v48  ;;  %v985_v1 = vrot.slane %v984_v57, 1  ;;  %v1004_v2 = vrot.slane %v1003_v58, 2  ;;  %v1351_v3 = vsel %vm1274_vm1, %v972_v55, %v965_v34  ;;  %v396_v34 = vld [vmem:[%s2643_s24 + $0x2f0] sm:$0xff]  ;;  %v1527_v55 = vld [vmem:[%s3121_s3 + $0x8] sm:$0xff] }
  0xc3   : > { %v992_v4 = vrot.slane %v991_v59, 1  ;;  %v998_v5 = vadd.f32 %v997_v60, %v996_v52  ;;  %v1010_v6 = vadd.f32 %v1009_v61, %v1008_v53  ;;  %v1017_v8 = vadd.f32 %v1016_v63, %v1015_v54  ;;  %v1526_v54 = vld [vmem:[%s3121_s3] sm:$0xff] }
  0xc4   : > { %v986_v9 = vadd.f32 %v985_v1, %v984_v57  ;;  %v1005_v10 = vadd.f32 %v1004_v2, %v1003_v58  ;;  %v1352_v11 = vsel %vm1276_vm2, %v979_v0, %v1351_v3  ;;  %v1022_v12 = vsel %vm398_vm0, %v391_v62, 0.0  ;;  %v1528_v0 = vld [vmem:[%s3121_s3 + $0x10] sm:$0xff]  ;;  %v1529_v1 = vld [vmem:[%s3121_s3 + $0x18] sm:$0xff] }
  0xc5   : > { %v993_v13 = vadd.f32 %v992_v4, %v991_v59  ;;  %v999_v14 = vrot.slane %v998_v5, 1  ;;  %v1011_v15 = vrot.slane %v1010_v6, 2  ;;  %v1018_v17 = vrot.slane %v1017_v8, 2 }
  0xc6   : > { %v1006_v18 = vrot.slane %v1005_v10, 1  ;;  %v1353_v19 = vsel %vm1278_vm3, %v986_v9, %v1352_v11  ;;  %v1023_v20 = vrot.slane %v1022_v12, 4  ;;  %v1029_v21 = vsel %vm398_vm0, %v392_v7, 0.0  ;;  %v1531_v11 = vld [vmem:[%s3121_s3 + $0x28] sm:$0xff] }
  0xc7   : > { %v1000_v22 = vadd.f32 %v999_v14, %v998_v5  ;;  %v1012_v23 = vadd.f32 %v1011_v15, %v1010_v6  ;;  %v1354_v24 = vsel %vm1280_vm4, %v993_v13, %v1353_v19  ;;  %v1019_v26 = vadd.f32 %v1018_v17, %v1017_v8 }
  0xc8   : > { %v1007_v27 = vadd.f32 %v1006_v18, %v1005_v10  ;;  %v1024_v28 = vadd.f32 %v1023_v20, %v1022_v12  ;;  %v1030_v29 = vrot.slane %v1029_v21, 4  ;;  %v1036_v30 = vsel %vm398_vm0, %v393_v16, 0.0  ;;  %v1530_v10 = vld [vmem:[%s3121_s3 + $0x20] sm:$0xff] }
  0xc9   : > { %v1013_v31 = vrot.slane %v1012_v23, 1  ;;  %v1355_v32 = vsel %vm1282_vm5, %v1000_v22, %v1354_v24  ;;  %v1020_v35 = vrot.slane %v1019_v26, 1  ;;  %v1037_v36 = vrot.slane %v1036_v30, 4 }
  0xca   : > { %v1356_v37 = vsel %vm1284_vm6, %v1007_v27, %v1355_v32  ;;  %v1025_v38 = vrot.slane %v1024_v28, 2  ;;  %v1031_v39 = vadd.f32 %v1030_v29, %v1029_v21  ;;  %v1043_v40 = vsel %vm398_vm0, %v394_v25, 0.0  ;;  %v1532_v27 = vld [vmem:[%s3121_s3 + $0x30] sm:$0xff] }
  0xcb   : > { %v1014_v41 = vadd.f32 %v1013_v31, %v1012_v23  ;;  %v1021_v43 = vadd.f32 %v1020_v35, %v1019_v26  ;;  %v1038_v44 = vadd.f32 %v1037_v36, %v1036_v30  ;;  %v1044_v45 = vrot.slane %v1043_v40, 4 }
  0xcc   : > { %v1026_v46 = vadd.f32 %v1025_v38, %v1024_v28  ;;  %v1032_v47 = vrot.slane %v1031_v39, 2  ;;  %v1050_v48 = vsel %vm398_vm0, %v395_v33, 0.0  ;;  %v1057_v49 = vsel %vm398_vm0, %v396_v34, 0.0  ;;  %v1533_v28 = vld [vmem:[%s3121_s3 + $0x38] sm:$0xff] }
  0xcd   : > { %v1357_v50 = vsel %vm1286_vm7, %v1014_v41, %v1356_v37  ;;  %v1039_v51 = vrot.slane %v1038_v44, 2  ;;  %v1045_v52 = vadd.f32 %v1044_v45, %v1043_v40  ;;  %v1051_v53 = vrot.slane %v1050_v48, 4 }
  0xce   : > { %2252 = vmatprep.mubr.msk.f32.mxu0 %vm398_vm0, %v1357_v50  ;;  %v1027_v56 = vrot.slane %v1026_v46, 1  ;;  %v1033_v57 = vadd.f32 %v1032_v47, %v1031_v39  ;;  %v1058_v58 = vrot.slane %v1057_v49, 4  ;;  %v1064_v59 = vsel %vm398_vm0, %v397_v42, 0.0  ;;  %v2140_v39 = vld [vmem:[%s3120_s2] ss:$0 sm:$0xff] }
  0xcf   : > { %v1040_v60 = vadd.f32 %v1039_v51, %v1038_v44  ;;  %v1046_v61 = vrot.slane %v1045_v52, 2  ;;  %v1052_v62 = vadd.f32 %v1051_v53, %v1050_v48  ;;  %v1065_v63 = vrot.slane %v1064_v59, 4 }
  0xd0   : > { %v1028_v2 = vadd.f32 %v1027_v56, %v1026_v46  ;;  %v1034_v3 = vrot.slane %v1033_v57, 1  ;;  %v1059_v4 = vadd.f32 %v1058_v58, %v1057_v49  ;;  %v2297_v5 = vpack.c.bf16 %v1527_v55, %v1526_v54 }
  0xd1   : > { %v1041_v6 = vrot.slane %v1040_v60, 1  ;;  %v1047_v7 = vadd.f32 %v1046_v61, %v1045_v52  ;;  %v1053_v8 = vrot.slane %v1052_v62, 2  ;;  %v1066_v9 = vadd.f32 %v1065_v63, %v1064_v59 }
  0xd2   : > { %v1035_v12 = vadd.f32 %v1034_v3, %v1033_v57  ;;  %v1060_v13 = vrot.slane %v1059_v4, 2  ;;  %v1358_v14 = vsel %vm1274_vm1, %v1028_v2, %v1021_v43  ;;  %2298 = vmatprep.subr.bf16.mxu0 %v2297_v5  ;;  %v2301_v15 = vpack.c.bf16 %v1529_v1, %v1528_v0  ;;  %2313 = vmatprep.subr.bf16.mxu1 %v2297_v5 }
  0xd3   : > { %v1042_v16 = vadd.f32 %v1041_v6, %v1040_v60  ;;  %v1048_v17 = vrot.slane %v1047_v7, 1  ;;  %v1054_v18 = vadd.f32 %v1053_v8, %v1052_v62  ;;  %v1067_v19 = vrot.slane %v1066_v9, 2  ;;  %2300 = vmatpush3.bf16.msra.mxu0 %v2297_v5  ;;  %2317 = vmatpush3.bf16.msra.mxu1 %v2297_v5 }
  0xd4   : > { %v1061_v20 = vadd.f32 %v1060_v13, %v1059_v4  ;;  %v1359_v21 = vsel %vm1276_vm2, %v1035_v12, %v1358_v14  ;;  %2302 = vmatprep.subr.bf16.mxu0 %v2301_v15  ;;  %v2305_v22 = vpack.c.bf16 %v1531_v11, %v1530_v10  ;;  %2314 = vmatprep.subr.bf16.mxu1 %v2301_v15  ;;  %v2975_v12 = vld [vmem:[%s3122_s4] ss:$0 sm:$0xff] }
  0xd5   : > { %v1049_v23 = vadd.f32 %v1048_v17, %v1047_v7  ;;  %v1055_v24 = vrot.slane %v1054_v18, 1  ;;  %v1068_v25 = vadd.f32 %v1067_v19, %v1066_v9  ;;  %v1360_v26 = vsel %vm1278_vm3, %v1042_v16, %v1359_v21  ;;  %v2982_v17 = vld [vmem:[%s3123_s5] ss:$0 sm:$0xff] }
  0xd6   : > { %v1062_v29 = vrot.slane %v1061_v20, 1  ;;  %v2309_v34 = vpack.c.bf16 %v1533_v28, %v1532_v27 }
  0xd7   : > { %v1056_v30 = vadd.f32 %v1055_v24, %v1054_v18  ;;  %v1069_v31 = vrot.slane %v1068_v25, 1  ;;  %v1361_v32 = vsel %vm1280_vm4, %v1049_v23, %v1360_v26  ;;  %2304 = vmatpush3.bf16.msra.mxu0 %v2301_v15  ;;  %2318 = vmatpush3.bf16.msra.mxu1 %v2301_v15 }
  0xd8   : > { %v1063_v33 = vadd.f32 %v1062_v29, %v1061_v20  ;;  %2306 = vmatprep.subr.bf16.mxu0 %v2305_v22  ;;  %2315 = vmatprep.subr.bf16.mxu1 %v2305_v22 }
  0xd9   : > { %v1070_v35 = vadd.f32 %v1069_v31, %v1068_v25  ;;  %v1362_v36 = vsel %vm1282_vm5, %v1056_v30, %v1361_v32 }
  0xda   : > { %v1363_v37 = vsel %vm1284_vm6, %v1063_v33, %v1362_v36 }
  0xdb   : > { %v1364_v38 = vsel %vm1286_vm7, %v1070_v35, %v1363_v37  ;;  %2308 = vmatpush3.bf16.msra.mxu0 %v2305_v22  ;;  %2319 = vmatpush3.bf16.msra.mxu1 %v2305_v22 }
  0xdc   : > { %2253 = vmatmul.mubr.msk.f32.gmra.mrb[10].mxu0 %vm398_vm0, %v1364_v38  ;;  %2310 = vmatprep.subr.bf16.mxu0 %v2309_v34 }
  0xdd   : > { %2316 = vmatprep.subr.bf16.mxu1 %v2309_v34 }
  0xdf   : > { %2312 = vmatpush3.bf16.msra.mxu0 %v2309_v34  ;;  %2320 = vmatpush3.bf16.msra.mxu1 %v2309_v34 }
 0x112   : > { %v2239_v40 = vpop.f32.mrb[0].mxu0 }
 0x113   : > { %v1461_v41 = vadd.f32 %v2239_v40, %v2140_v39  ;;  %v1455_v42 = vpop.f32.mrb[1].mxu0 }
 0x114   : > { %v1456_v43 = vadd.f32 %v2140_v39, %v1455_v42 }
 0x115   : > { %v1515_v45 = vmax.f32 %v1461_v41, 0.0 }
 0x116   : > { %v1514_v44 = vmax.f32 %v1456_v43, 0.0 }
 0x118   : > { %2271 = vmatprep.mubr.msk.f32.mxu0 %vm1541_vm8, %v1514_v44 }
 0x119   : > { %2272 = vmatmul.mubr.msk.f32.vlgmr.msra.gmra.mrb[12].mxu0 %vm1541_vm8, %v1515_v45 }
 0x133   : > { %v2242_v46 = vpop.f32.mrb[2].mxu0 }
 0x134   : > { %v1471_v47 = vadd.f32 %v2242_v46, %v2140_v39  ;;  %v1465_v48 = vpop.f32.mrb[3].mxu0 }
 0x135   : > { %v1466_v49 = vadd.f32 %v2140_v39, %v1465_v48 }
 0x136   : > { %v1517_v51 = vmax.f32 %v1471_v47, 0.0 }
 0x137   : > { %v1516_v50 = vmax.f32 %v1466_v49, 0.0 }
 0x139   : > { %2274 = vmatprep.mubr.msk.f32.mxu1 %vm1541_vm8, %v1516_v50 }
 0x13a   : > { %2275 = vmatmul.mubr.msk.f32.vlgmr.msra.gmra.mrb[0].mxu1 %vm1541_vm8, %v1517_v51 }
 0x151   : > { %v2245_v52 = vpop.f32.mrb[4].mxu0 }
 0x152   : > { %v1481_v53 = vadd.f32 %v2245_v52, %v2140_v39  ;;  %v1475_v54 = vpop.f32.mrb[5].mxu0 }
 0x153   : > { %v1476_v55 = vadd.f32 %v2140_v39, %v1475_v54 }
 0x154   : > { %v1519_v56 = vmax.f32 %v1481_v53, 0.0 }
 0x155   : > { %v1518_v57 = vmax.f32 %v1476_v55, 0.0 }
 0x157   : > { %2277 = vmatprep.mubr.msk.f32.mxu1 %vm1541_vm8, %v1518_v57 }
 0x158   : > { %2278 = vmatmul.mubr.msk.f32.gmra.mrb[2].mxu1 %vm1541_vm8, %v1519_v56 }
 0x170   : > { %v2248_v58 = vpop.f32.mrb[6].mxu0 }
 0x171   : > { %v1491_v59 = vadd.f32 %v2248_v58, %v2140_v39  ;;  %v1485_v60 = vpop.f32.mrb[7].mxu0 }
 0x172   : > { %v1486_v61 = vadd.f32 %v2140_v39, %v1485_v60 }
 0x173   : > { %v1521_v62 = vmax.f32 %v1491_v59, 0.0 }
 0x174   : > { %v1520_v63 = vmax.f32 %v1486_v61, 0.0 }
 0x176   : > { %2280 = vmatprep.mubr.msk.f32.mxu1 %vm1541_vm8, %v1520_v63 }
 0x177   : > { %2281 = vmatmul.mubr.msk.f32.gmra.mrb[4].mxu1 %vm1541_vm8, %v1521_v62 }
 0x191   : > { %v2251_v0 = vpop.f32.mrb[8].mxu0 }
 0x192   : > { %v1501_v1 = vadd.f32 %v2251_v0, %v2140_v39  ;;  %v1495_v2 = vpop.f32.mrb[9].mxu0  ;;  %v3012_v0 = vld [vmem:[#allocation2] ss:$0 sm:$0xff] }
 0x193   : > { %v1496_v3 = vadd.f32 %v2140_v39, %v1495_v2 }
 0x194   : > { %v1523_v4 = vmax.f32 %v1501_v1, 0.0 }
 0x195   : > { %v1522_v5 = vmax.f32 %v1496_v3, 0.0 }
 0x197   : > { %2283 = vmatprep.mubr.msk.f32.mxu1 %vm1541_vm8, %v1522_v5 }
 0x198   : > { %2284 = vmatmul.mubr.msk.f32.gmra.mrb[6].mxu1 %vm1541_vm8, %v1523_v4 }
 0x1af   : > { %v2254_v6 = vpop.f32.mrb[10].mxu0 }
 0x1b0   : > { %v1511_v7 = vadd.f32 %v2254_v6, %v2140_v39  ;;  %v1505_v8 = vpop.f32.mrb[11].mxu0 }
 0x1b1   : > { %v1506_v9 = vadd.f32 %v2140_v39, %v1505_v8 }
 0x1b2   : > { %v1525_v10 = vmax.f32 %v1511_v7, 0.0 }
 0x1b3   : > { %v1524_v11 = vmax.f32 %v1506_v9, 0.0 }
 0x1b5   : > { %2286 = vmatprep.mubr.msk.f32.mxu1 %vm1541_vm8, %v1524_v11 }
 0x1b6   : > { %2287 = vmatmul.mubr.msk.f32.gmra.mrb[8].mxu1 %vm1541_vm8, %v1525_v10 }
 0x1ec   : > { %v2273_v13 = vpop.f32.mrb[12].mxu0 }
 0x1ed   : > { %v1650_v14 = vadd.f32 %v2273_v13, %v2975_v12  ;;  %v1644_v15 = vpop.f32.mrb[13].mxu0 }
 0x1ee   : > { %v1645_v16 = vadd.f32 %v2975_v12, %v1644_v15 }
 0x1ef   : > { %v1704_v18 = vmax.f32 %v1650_v14, 0.0 }
 0x1f0   : > { %v1703_v19 = vmax.f32 %v1645_v16, 0.0 }
 0x1f1   : > { %v1723_v20 = vmul.f32 %v2982_v17, %v1704_v18 }
 0x1f2   : > { %v1722_v22 = vmul.f32 %v2982_v17, %v1703_v19 }
 0x1f3   : > { %v1737_v21 = vsel %vm398_vm0, %v1723_v20, 0.0 }
 0x1f4   : > { %1738 = vadd.xlane.f32.xlu0 %v1737_v21  ;;  %v1734_v23 = vsel %vm398_vm0, %v1722_v22, 0.0 }
 0x1f8   : > { %1735 = vadd.xlane.f32.xlu0 %v1734_v23 }
 0x20d   : > { %v2276_v24 = vpop.f32.mrb[0].mxu1 }
 0x20e   : > { %v1660_v25 = vadd.f32 %v2276_v24, %v2975_v12  ;;  %v1654_v26 = vpop.f32.mrb[1].mxu1 }
 0x20f   : > { %v1655_v27 = vadd.f32 %v2975_v12, %v1654_v26 }
 0x210   : > { %v1706_v28 = vmax.f32 %v1660_v25, 0.0 }
 0x211   : > { %v1705_v29 = vmax.f32 %v1655_v27, 0.0 }
 0x212   : > { %v1725_v30 = vmul.f32 %v2982_v17, %v1706_v28 }
 0x213   : > { %v1724_v32 = vmul.f32 %v2982_v17, %v1705_v29 }
 0x214   : > { %v1743_v31 = vsel %vm398_vm0, %v1725_v30, 0.0 }
 0x215   : > { %1744 = vadd.xlane.f32.xlu1 %v1743_v31  ;;  %v1740_v33 = vsel %vm398_vm0, %v1724_v32, 0.0 }
 0x219   : > { %1741 = vadd.xlane.f32.xlu1 %v1740_v33 }
 0x22b   : > { %v2279_v34 = vpop.f32.mrb[2].mxu1 }
 0x22c   : > { %v1670_v35 = vadd.f32 %v2279_v34, %v2975_v12  ;;  %v1664_v36 = vpop.f32.mrb[3].mxu1 }
 0x22d   : > { %v1665_v37 = vadd.f32 %v2975_v12, %v1664_v36 }
 0x22e   : > { %v1708_v38 = vmax.f32 %v1670_v35, 0.0 }
 0x22f   : > { %v1707_v39 = vmax.f32 %v1665_v37, 0.0 }
 0x230   : > { %v1727_v40 = vmul.f32 %v2982_v17, %v1708_v38 }
 0x231   : > { %v1726_v41 = vmul.f32 %v2982_v17, %v1707_v39 }
 0x232   : > { %v1749_v42 = vsel %vm398_vm0, %v1727_v40, 0.0 }
 0x233   : > { %v1746_v43 = vsel %vm398_vm0, %v1726_v41, 0.0  ;;  %1750 = vadd.xlane.f32.xlu1 %v1749_v42 }
 0x234   : > { %1747 = vadd.xlane.f32.xlu0 %v1746_v43 }
 0x24a   : > { %v2282_v44 = vpop.f32.mrb[4].mxu1 }
 0x24b   : > { %v1680_v45 = vadd.f32 %v2282_v44, %v2975_v12  ;;  %v1674_v46 = vpop.f32.mrb[5].mxu1 }
 0x24c   : > { %v1675_v47 = vadd.f32 %v2975_v12, %v1674_v46 }
 0x24d   : > { %v1710_v48 = vmax.f32 %v1680_v45, 0.0 }
 0x24e   : > { %v1709_v49 = vmax.f32 %v1675_v47, 0.0 }
 0x24f   : > { %v1729_v50 = vmul.f32 %v2982_v17, %v1710_v48 }
 0x250   : > { %v1728_v51 = vmul.f32 %v2982_v17, %v1709_v49 }
 0x251   : > { %v1755_v52 = vsel %vm398_vm0, %v1729_v50, 0.0 }
 0x252   : > { %v1752_v53 = vsel %vm398_vm0, %v1728_v51, 0.0  ;;  %1756 = vadd.xlane.f32.xlu1 %v1755_v52 }
 0x253   : > { %1753 = vadd.xlane.f32.xlu0 %v1752_v53 }
 0x26b   : > { %v2285_v54 = vpop.f32.mrb[6].mxu1 }
 0x26c   : > { %v1690_v55 = vadd.f32 %v2285_v54, %v2975_v12  ;;  %v1684_v56 = vpop.f32.mrb[7].mxu1 }
 0x26d   : > { %v1685_v57 = vadd.f32 %v2975_v12, %v1684_v56 }
 0x26e   : > { %v1712_v58 = vmax.f32 %v1690_v55, 0.0 }
 0x26f   : > { %v1711_v59 = vmax.f32 %v1685_v57, 0.0 }
 0x270   : > { %v1731_v60 = vmul.f32 %v2982_v17, %v1712_v58 }
 0x271   : > { %v1730_v61 = vmul.f32 %v2982_v17, %v1711_v59 }
 0x272   : > { %v1761_v62 = vsel %vm398_vm0, %v1731_v60, 0.0 }
 0x273   : > { %v1758_v63 = vsel %vm398_vm0, %v1730_v61, 0.0  ;;  %1762 = vadd.xlane.f32.xlu1 %v1761_v62 }
 0x274   : > { %1759 = vadd.xlane.f32.xlu0 %v1758_v63 }
 0x281   : > { %v1739_v1 = vpop.xlane.xlu0 %1738 }
 0x282   : > { %v1778_v2 = vadd.f32 %v3012_v0, %v1739_v1 }
 0x284   : > { %v2169_v3 = vmul.f32 -1.442695, %v1778_v2 }
 0x285   : > { %v1736_v4 = vpop.xlane.xlu0 %1735 }
 0x286   : > { %2411 = vpow2.f32 %v2169_v3  ;;  %v1777_v5 = vadd.f32 %v3012_v0, %v1736_v4 }
 0x288   : > { %v2168_v6 = vmul.f32 -1.442695, %v1777_v5 }
 0x289   : > { %v2288_v7 = vpop.f32.mrb[8].mxu1 }
 0x28a   : > { %v1700_v8 = vadd.f32 %v2288_v7, %v2975_v12  ;;  %v1694_v9 = vpop.f32.mrb[9].mxu1  ;;  %2413 = vpow2.f32 %v2168_v6 }
 0x28b   : > { %v1695_v10 = vadd.f32 %v2975_v12, %v1694_v9 }
 0x28c   : > { %v1714_v11 = vmax.f32 %v1700_v8, 0.0 }
 0x28d   : > { %v1713_v13 = vmax.f32 %v1695_v10, 0.0 }
 0x28e   : > { %v1733_v14 = vmul.f32 %v2982_v17, %v1714_v11 }
 0x28f   : > { %v1732_v15 = vmul.f32 %v2982_v17, %v1713_v13 }
 0x290   : > { %v2412_v16 = vpop.eup %2411  ;;  %v1767_v18 = vsel %vm398_vm0, %v1733_v14, 0.0 }
 0x291   : > { %v1764_v19 = vsel %vm398_vm0, %v1732_v15, 0.0  ;;  %1768 = vadd.xlane.f32.xlu1 %v1767_v18  ;;  %v1826_v20 = vadd.f32 1.0, %v2412_v16 }
 0x292   : > { %1765 = vadd.xlane.f32.xlu0 %v1764_v19 }
 0x293   : > { %2415 = vrcp.f32 %v1826_v20 }
 0x294   : > { %v2414_v21 = vpop.eup %2413 }
 0x295   : > { %v1825_v22 = vadd.f32 1.0, %v2414_v21 }
 0x297   : > { %2417 = vrcp.f32 %v1825_v22 }
 0x29d   : > { %v2416_v12 = vpop.eup %2415 }
 0x29e   : > { %1863 = vst.msk [vmem:[%s3023_s14 + $0x8] sm:$0xff] %vm1861_vm9, %v2416_v12 }
 0x2a1   : > { %v2418_v17 = vpop.eup %2417 }
 0x2a2   : > { %v1745_v23 = vpop.xlane.xlu1 %1744  ;;  %1862 = vst.msk [vmem:[%s3023_s14] sm:$0xff] %vm1861_vm9, %v2418_v17 }
 0x2a3   : > { %v1780_v24 = vadd.f32 %v3012_v0, %v1745_v23 }
 0x2a5   : > { %v2171_v25 = vmul.f32 -1.442695, %v1780_v24 }
 0x2a6   : > { %v1742_v26 = vpop.xlane.xlu1 %1741 }
 0x2a7   : > { %2419 = vpow2.f32 %v2171_v25  ;;  %v1779_v27 = vadd.f32 %v3012_v0, %v1742_v26 }
 0x2a9   : > { %v2170_v28 = vmul.f32 -1.442695, %v1779_v27 }
 0x2ab   : > { %2421 = vpow2.f32 %v2170_v28 }
 0x2b1   : > { %v2420_v29 = vpop.eup %2419 }
 0x2b2   : > { %v1828_v30 = vadd.f32 1.0, %v2420_v29 }
 0x2b4   : > { %2423 = vrcp.f32 %v1828_v30 }
 0x2b5   : > { %v2422_v31 = vpop.eup %2421 }
 0x2b6   : > { %v1827_v32 = vadd.f32 1.0, %v2422_v31 }
 0x2b8   : > { %2425 = vrcp.f32 %v1827_v32 }
 0x2be   : > { %v2424_v33 = vpop.eup %2423 }
 0x2bf   : > { %1865 = vst.msk [vmem:[%s3023_s14 + $0x18] sm:$0xff] %vm1861_vm9, %v2424_v33 }
 0x2c0   : > { %v1751_v34 = vpop.xlane.xlu1 %1750 }
 0x2c1   : > { %v1748_v35 = vpop.xlane.xlu0 %1747  ;;  %v1782_v36 = vadd.f32 %v3012_v0, %v1751_v34 }
 0x2c2   : > { %v2426_v37 = vpop.eup %2425  ;;  %v1781_v38 = vadd.f32 %v3012_v0, %v1748_v35 }
 0x2c3   : > { %1864 = vst.msk [vmem:[%s3023_s14 + $0x10] sm:$0xff] %vm1861_vm9, %v2426_v37  ;;  %v2173_v39 = vmul.f32 -1.442695, %v1782_v36 }
 0x2c4   : > { %v2172_v40 = vmul.f32 -1.442695, %v1781_v38 }
 0x2c5   : > { %2427 = vpow2.f32 %v2173_v39 }
 0x2c6   : > { %2429 = vpow2.f32 %v2172_v40 }
 0x2cf   : > { %v2428_v41 = vpop.eup %2427 }
 0x2d0   : > { %v2430_v42 = vpop.eup %2429  ;;  %v1830_v43 = vadd.f32 1.0, %v2428_v41 }
 0x2d1   : > { %v1829_v44 = vadd.f32 1.0, %v2430_v42 }
 0x2d2   : > { %2431 = vrcp.f32 %v1830_v43 }
 0x2d3   : > { %2433 = vrcp.f32 %v1829_v44 }
 0x2dc   : > { %v2432_v45 = vpop.eup %2431 }
 0x2dd   : > { %v2434_v46 = vpop.eup %2433  ;;  %1867 = vst.msk [vmem:[%s3023_s14 + $0x28] sm:$0xff] %vm1861_vm9, %v2432_v45 }
 0x2de   : > { %1866 = vst.msk [vmem:[%s3023_s14 + $0x20] sm:$0xff] %vm1861_vm9, %v2434_v46 }
 0x2df   : > { %v1757_v47 = vpop.xlane.xlu1 %1756 }
 0x2e0   : > { %v1754_v48 = vpop.xlane.xlu0 %1753  ;;  %v1784_v49 = vadd.f32 %v3012_v0, %v1757_v47 }
 0x2e1   : > { %v1783_v50 = vadd.f32 %v3012_v0, %v1754_v48 }
 0x2e2   : > { %v2175_v51 = vmul.f32 -1.442695, %v1784_v49 }
 0x2e3   : > { %v2174_v52 = vmul.f32 -1.442695, %v1783_v50 }
 0x2e4   : > { %2435 = vpow2.f32 %v2175_v51 }
 0x2e5   : > { %2437 = vpow2.f32 %v2174_v52 }
 0x2ee   : > { %v2436_v53 = vpop.eup %2435 }
 0x2ef   : > { %v2438_v54 = vpop.eup %2437  ;;  %v1832_v55 = vadd.f32 1.0, %v2436_v53 }
 0x2f0   : > { %v1831_v56 = vadd.f32 1.0, %v2438_v54 }
 0x2f1   : > { %2439 = vrcp.f32 %v1832_v55 }
 0x2f2   : > { %2441 = vrcp.f32 %v1831_v56 }
 0x2fb   : > { %v2440_v57 = vpop.eup %2439 }
 0x2fc   : > { %v2442_v58 = vpop.eup %2441  ;;  %1869 = vst.msk [vmem:[%s3023_s14 + $0x38] sm:$0xff] %vm1861_vm9, %v2440_v57 }
 0x2fd   : > { %1868 = vst.msk [vmem:[%s3023_s14 + $0x30] sm:$0xff] %vm1861_vm9, %v2442_v58 }
 0x300   : > { %v1763_v59 = vpop.xlane.xlu1 %1762 }
 0x301   : > { %v1760_v60 = vpop.xlane.xlu0 %1759  ;;  %v1786_v61 = vadd.f32 %v3012_v0, %v1763_v59 }
 0x302   : > { %v1785_v62 = vadd.f32 %v3012_v0, %v1760_v60 }
 0x303   : > { %v2177_v63 = vmul.f32 -1.442695, %v1786_v61 }
 0x304   : > { %v2176_v1 = vmul.f32 -1.442695, %v1785_v62 }
 0x305   : > { %2443 = vpow2.f32 %v2177_v63 }
 0x306   : > { %2445 = vpow2.f32 %v2176_v1 }
 0x30f   : > { %v2444_v2 = vpop.eup %2443 }
 0x310   : > { %v2446_v3 = vpop.eup %2445  ;;  %v1834_v4 = vadd.f32 1.0, %v2444_v2 }
 0x311   : > { %v1833_v5 = vadd.f32 1.0, %v2446_v3 }
 0x312   : > { %2447 = vrcp.f32 %v1834_v4 }
 0x313   : > { %2449 = vrcp.f32 %v1833_v5 }
 0x31c   : > { %v2448_v6 = vpop.eup %2447 }
 0x31d   : > { %v2450_v7 = vpop.eup %2449  ;;  %1871 = vst.msk [vmem:[%s3023_s14 + $0x48] sm:$0xff] %vm1861_vm9, %v2448_v6 }
 0x31e   : > { %1870 = vst.msk [vmem:[%s3023_s14 + $0x40] sm:$0xff] %vm1861_vm9, %v2450_v7  ;;  %v1769_v8 = vpop.xlane.xlu1 %1768 }
 0x31f   : > { %v1766_v9 = vpop.xlane.xlu0 %1765  ;;  %v1788_v10 = vadd.f32 %v3012_v0, %v1769_v8 }
 0x320   : > { %v1787_v11 = vadd.f32 %v3012_v0, %v1766_v9 }
 0x321   : > { %v2179_v13 = vmul.f32 -1.442695, %v1788_v10 }
 0x322   : > { %v2178_v14 = vmul.f32 -1.442695, %v1787_v11 }
 0x323   : > { %2451 = vpow2.f32 %v2179_v13 }
 0x324   : > { %2453 = vpow2.f32 %v2178_v14 }
 0x32d   : > { %v2452_v15 = vpop.eup %2451 }
 0x32e   : > { %v2454_v16 = vpop.eup %2453  ;;  %v1836_v18 = vadd.f32 1.0, %v2452_v15 }
 0x32f   : > { %v1835_v19 = vadd.f32 1.0, %v2454_v16 }
 0x330   : > { %2455 = vrcp.f32 %v1836_v18 }
 0x331   : > { %2457 = vrcp.f32 %v1835_v19 }
 0x336   : > { %1880 = sbr.rel (!%p2619_p4) target bundleno = 890 (0x37a), region = 52 }
 0x33a   : > { %v2456_v20 = vpop.eup %2455 }
 0x33b   : > { %v2458_v21 = vpop.eup %2457  ;;  %1873 = vst.msk [vmem:[%s3023_s14 + $0x58] sm:$0xff] %vm1861_vm9, %v2456_v20 }
 0x33c   : > { %1872 = vst.msk [vmem:[%s3023_s14 + $0x50] sm:$0xff] %vm1861_vm9, %v2458_v21 }
 0x33d   : > { %s3134_s19 = smov (!%p1883_p8, %s1882_s19), 12 }
 0x33e   : > { %s2180_s20 = sshll.u32 %s3134_s19, 7 }
 0x33f   : > { %p2183_p9 = scmp.eq.s32.totalorder %s2180_s20, 0 }
 0x340   : > { %2459 = sdivrem.u32 (!%p2183_p9), %s3134_s19, 12 }
 0x341   : > { %1891 = sbr.rel (%p2183_p9) target bundleno = 890 (0x37a), region = 56 }
 0x349   : > { %s3072_s10 = spop.drf %2459 }
 0x34a   : > { %p2184_p10 = scmp.le.s32.totalorder %s3072_s10, 0 }
 0x34b   : > { %s3127_s6 = smov (!%p2184_p10), %s3066_s18  ;;  %s3128_s17 = smov (!%p2184_p10), %s3023_s14 }
 0x34c   : > { %2091 = sbr.rel (%p2184_p10) target bundleno = 861 (0x35d), region = 132  ;;  %s3081_s21 = smov (!%p2184_p10), 0  }
 0x34d   : > { %s3083_s22 = smov (!%p2184_p10), 0  }
 0x353 LB: >> { %v1977_v0 = vld [vmem:[%s2525_s17] sm:$0xff]  ;;  %v1979_v22 = vld [vmem:[%s2525_s17 + $0x8] sm:$0xff]  ;;  %v1981_v12 = vld [vmem:[%s2525_s17 + $0x10] sm:$0xff]  ;;  %s2001_s23 = sadd.s32 1, %s2529_s21  ;;  %s1971_s22 = sadd.s32 1, %s2533_s22   ;;  %s2533_s22 = sphi %s3083_s22, %s1971_s22   ;;  %s2529_s21 = sphi %s3081_s21, %s3129_s21   ;;  %s2525_s17 = sphi %s3128_s17, %s2006_s17   ;;  %s2521_s6 = sphi %s3127_s6, %s2007_s6  }
 0x354   : >> { %1978 = vst [vmem:[%s2521_s6] sm:$0xff] %v1977_v0  ;;  %1980 = vst [vmem:[%s2521_s6 + $0x8] sm:$0xff] %v1979_v22  ;;  %v1983_v17 = vld [vmem:[%s2525_s17 + $0x18] sm:$0xff]  ;;  %v1985_v23 = vld [vmem:[%s2525_s17 + $0x20] sm:$0xff]  ;;  %p2002_p11 = scmp.ge.s32.totalorder %s2001_s23, %s3072_s10  ;;  %p1970_p12 = scmp.ge.s32.totalorder %s1971_s22, %s3072_s10 }
 0x355   : >> { %1982 = vst [vmem:[%s2521_s6 + $0x10] sm:$0xff] %v1981_v12  ;;  %v1987_v24 = vld [vmem:[%s2525_s17 + $0x28] sm:$0xff]  ;;  %1984 = vst [vmem:[%s2521_s6 + $0x18] sm:$0xff] %v1983_v17  ;;  %v1989_v25 = vld [vmem:[%s2525_s17 + $0x30] sm:$0xff] }
 0x356   : >> { %1986 = vst [vmem:[%s2521_s6 + $0x20] sm:$0xff] %v1985_v23  ;;  %1988 = vst [vmem:[%s2521_s6 + $0x28] sm:$0xff] %v1987_v24  ;;  %v1991_v26 = vld [vmem:[%s2525_s17 + $0x38] sm:$0xff]  ;;  %v1993_v27 = vld [vmem:[%s2525_s17 + $0x40] sm:$0xff]  ;;  %s3136_s23 = smov (%p2002_p11, %s2001_s23), 0  ;;  %1973 = sbr.rel (!%p1970_p12) target bundleno = 851 (0x353), region = 138 }
 0x357   : >> { %1990 = vst [vmem:[%s2521_s6 + $0x30] sm:$0xff] %v1989_v25  ;;  %1992 = vst [vmem:[%s2521_s6 + $0x38] sm:$0xff] %v1991_v26  ;;  %v1995_v28 = vld [vmem:[%s2525_s17 + $0x48] sm:$0xff]  ;;  %v1997_v29 = vld [vmem:[%s2525_s17 + $0x50] sm:$0xff]  ;;  %s2004_s24 = smul.u32 96, %s3136_s23  ;;  %s3129_s21 = smov %s3136_s23 }
 0x358   : >> { %1994 = vst [vmem:[%s2521_s6 + $0x40] sm:$0xff] %v1993_v27  ;;  %v1999_v30 = vld [vmem:[%s2525_s17 + $0x58] sm:$0xff]  ;;  %1996 = vst [vmem:[%s2521_s6 + $0x48] sm:$0xff] %v1995_v28 }
 0x359   : >> { %1998 = vst [vmem:[%s2521_s6 + $0x50] sm:$0xff] %v1997_v29  ;;  %2000 = vst [vmem:[%s2521_s6 + $0x58] sm:$0xff] %v1999_v30  ;;  %s2006_s17 = scalar_lea.vmem %s3023_s14, %s2004_s24 [#allocation3]   ;;  %s2007_s6 = scalar_lea.vmem %s3066_s18, %s2004_s24  }
 0x35d PF: > { %2461 = sdivrem.u32 %s3134_s19, 12 }
 0x35e   : > { %s2185_s25 = smul.u32 96, %s3072_s10 }
 0x360   : > { %s2012_s28 = scalar_lea.vmem %s3023_s14, %s2185_s25 [#allocation3]   ;;  %s2014_s30 = scalar_lea.vmem %s3066_s18, %s2185_s25  }
 0x366   : > { %s2462_s8 = spop.drf %2461 }
 0x367   : > { %p2187_p13 = scmp.le.s32.totalorder %s2462_s8, 0 }
 0x368   : > { %s2535_s11 = smov (!%p2187_p13), %s2014_s30   ;;  %s2539_s12 = smov (!%p2187_p13), %s2012_s28  }
 0x369   : > { %2105 = sbr.rel (%p2187_p13) target bundleno = 890 (0x37a), region = 143  ;;  %s2543_s13 = smov (!%p2187_p13), 0  }
 0x36a   : > { %s2547_s26 = smov (!%p2187_p13), 0  }
 0x370 LB: >> { %v2024_v31 = vld [vmem:[%s2541_s12] sm:$0xff]  ;;  %s2026_s15 = sadd.s32 1, %s2545_s13  ;;  %s2018_s26 = sadd.s32 1, %s2549_s26   ;;  %s2549_s26 = sphi %s2547_s26, %s2018_s26   ;;  %s2545_s13 = sphi %s2543_s13, %s2544_s13   ;;  %s2541_s12 = sphi %s2539_s12, %s2031_s12   ;;  %s2537_s11 = sphi %s2535_s11, %s2032_s11  }
 0x371   : >> { %2025 = vst [vmem:[%s2537_s11] sm:$0xff] %v2024_v31  ;;  %p2027_p0 = scmp.ge.s32.totalorder %s2026_s15, %s2462_s8  ;;  %p2017_p1 = scmp.ge.s32.totalorder %s2018_s26, %s2462_s8 }
 0x373   : >> { %s3138_s15 = smov (%p2027_p0, %s2026_s15), 0  ;;  %2020 = sbr.rel (!%p2017_p1) target bundleno = 880 (0x370), region = 149 }
 0x374   : >> { %s2188_s14 = sshll.u32 %s3138_s15, 3  ;;  %s2544_s13 = smov %s3138_s15  }
 0x375   : >> { %s2031_s12 = scalar_lea.vmem %s2012_s28, %s2188_s14 [#allocation3]   ;;  %s2032_s11 = scalar_lea.vmem %s2014_s30, %s2188_s14  }
 0x37a PF: > { %p16_p2 = scmp.ge.s32.totalorder %s2609_s29, 4   ;;  %s3130_s26 = smov %s2513_s27 }
 0x37b   : > { %s3131_s27 = smov %s2617_s9  ;;  %s3132_s28 = smov %s2609_s29 }
 0x37c   :  { %18 = sbr.rel (!%p16_p2) target bundleno = 5 (0x5), region = 160 }

</bundles_post_ra>
